<compile_context>
chip_gen: v7x
topology: tpu7x:2x2x1
jax: 0.10.0
libtpu: 0.0.40
codegen_flags: <defaults>
</compile_context>

<pallas_src>
import jax
import jax.numpy as jnp
import numpy as np
from jax.experimental import pallas as pl
from jax.experimental.pallas import tpu as pltpu

PAD_token = 0


def _context_gru_kernel(x_ref, len_ref,
                        wih_f_ref, whh_f_ref, bih_f_ref, bhh_f_ref,
                        wih_b_ref, whh_b_ref, bih_b_ref, bhh_b_ref,
                        wpf_ref, wpb_ref, bp_ref,
                        out_ref, hid_ref):
    # x_ref   : (S*B, E) time-major-flat embeddings (row t*B + b == embed[b, t])
    # len_ref : (B, 1) int32 sequence lengths
    # w*_ref  : pre-transposed GRU weights (E,3H)/(H,3H), biases (1,3H), gates [r|z|n]
    # wpf/wpb : projector weight split into forward/backward halves, each (H, Hout)
    # bp_ref  : (1, Hout)
    # out_ref : (S*B, Hout) time-major-flat projected outputs
    # hid_ref : (B, Hout) projected bridged last hidden state
    SB, E = x_ref.shape
    B = len_ref.shape[0]
    S = SB // B
    H = E                       # per-direction GRU hidden size == embedding_dim
    Hout = out_ref.shape[-1]

    x = x_ref[...]                                   # (S*B, E)
    lengths = len_ref[...]                           # (B, 1) int32

    wih_f = wih_f_ref[...]; whh_f = whh_f_ref[...]
    bih_f = bih_f_ref[...]; bhh_f = bhh_f_ref[...]
    wih_b = wih_b_ref[...]; whh_b = whh_b_ref[...]
    bih_b = bih_b_ref[...]; bhh_b = bhh_b_ref[...]
    wp_f = wpf_ref[...]; wp_b = wpb_ref[...]; bp = bp_ref[...]

    # ---- hoisted input-to-hidden matmuls: one big MXU call per direction ----
    gi_f = jnp.dot(x, wih_f, preferred_element_type=jnp.float32) + bih_f   # (S*B, 3H)
    gi_b = jnp.dot(x, wih_b, preferred_element_type=jnp.float32) + bih_b   # (S*B, 3H)

    # ---- pre-split the gate slabs off the serial path (3 lane slices total/dir) ----
    gi_f_r, gi_f_z, gi_f_n = gi_f[:, 0:H], gi_f[:, H:2 * H], gi_f[:, 2 * H:3 * H]
    gi_b_r, gi_b_z, gi_b_n = gi_b[:, 0:H], gi_b[:, H:2 * H], gi_b[:, 2 * H:3 * H]

    # ---- hoisted validity mask (packed-sequence semantics): (B, S) bool ----
    t_ids = jax.lax.broadcasted_iota(jnp.int32, (B, S), 1)
    valid = t_ids < lengths                                                # (B, S)

    h_f = jnp.zeros((B, H), jnp.float32)
    h_b = jnp.zeros((B, H), jnp.float32)
    fwd_outs = [None] * S
    bwd_outs = [None] * S

    # ---- fused fwd/bwd recurrence, statically unrolled (S small & static) ----
    # Only gh = h @ Whh (+gates) remains on the serial path; the two directions'
    # matmuls in each iteration are independent and overlap.
    for i in range(S):
        tf = i
        tb = S - 1 - i
        f0, f1 = tf * B, (tf + 1) * B
        b0, b1 = tb * B, (tb + 1) * B

        # forward direction, time step tf
        gh_f = jnp.dot(h_f, whh_f, preferred_element_type=jnp.float32) + bhh_f   # (B,3H)
        r_f = jax.nn.sigmoid(gi_f_r[f0:f1] + gh_f[:, 0:H])
        z_f = jax.nn.sigmoid(gi_f_z[f0:f1] + gh_f[:, H:2 * H])
        n_f = jnp.tanh(gi_f_n[f0:f1] + r_f * gh_f[:, 2 * H:3 * H])
        cand_f = (1.0 - z_f) * n_f + z_f * h_f
        v_f = valid[:, tf:tf + 1]                                                 # (B,1)
        h_f = jnp.where(v_f, cand_f, h_f)            # freeze state past length
        fwd_outs[tf] = jnp.where(v_f, h_f, 0.0)      # zero padded positions

        # backward direction, time step tb
        gh_b = jnp.dot(h_b, whh_b, preferred_element_type=jnp.float32) + bhh_b
        r_b = jax.nn.sigmoid(gi_b_r[b0:b1] + gh_b[:, 0:H])
        z_b = jax.nn.sigmoid(gi_b_z[b0:b1] + gh_b[:, H:2 * H])
        n_b = jnp.tanh(gi_b_n[b0:b1] + r_b * gh_b[:, 2 * H:3 * H])
        cand_b = (1.0 - z_b) * n_b + z_b * h_b
        v_b = valid[:, tb:tb + 1]
        h_b = jnp.where(v_b, cand_b, h_b)
        bwd_outs[tb] = jnp.where(v_b, h_b, 0.0)

    # ---- batched output projection: 2 MXU calls instead of S tiny ones ----
    # concat([fwd,bwd], -1) @ Wp  ==  fwd @ Wp[:H] + bwd @ Wp[H:]   (no lane concat)
    fwd_seq = jnp.concatenate(fwd_outs, axis=0)      # (S*B, H) time-major
    bwd_seq = jnp.concatenate(bwd_outs, axis=0)      # (S*B, H)
    out_ref[...] = (jnp.dot(fwd_seq, wp_f, preferred_element_type=jnp.float32)
                    + jnp.dot(bwd_seq, wp_b, preferred_element_type=jnp.float32)
                    + bp)                            # (S*B, Hout)

    # ---- bridged last hidden (fwd/bwd concat) -> projector ----
    hid_ref[...] = (jnp.dot(h_f, wp_f, preferred_element_type=jnp.float32)
                    + jnp.dot(h_b, wp_b, preferred_element_type=jnp.float32)
                    + bp)                            # (B, Hout)


def make_params(key, input_size, embedding_dim, hidden_size):
    """Deterministic synthetic parameters matching the PyTorch module's shapes."""
    E = embedding_dim
    H = E
    ks = jax.random.split(key, 11)
    bound_rnn = 1.0 / np.sqrt(H)
    bound_proj = 1.0 / np.sqrt(2 * E)

    def uni(k, shape, bound):
        return jax.random.uniform(k, shape, dtype=jnp.float32, minval=-bound, maxval=bound)

    return dict(
        # .weight.data.normal_(0, 0.1) (overwrites the padding row too, as in the source)
        embedding=0.1 * jax.random.normal(ks[0], (input_size, E), dtype=jnp.float32),
        # forward-direction GRU (gate order r|z|n, PyTorch convention)
        wih_f=uni(ks[1], (3 * H, E), bound_rnn),
        whh_f=uni(ks[2], (3 * H, H), bound_rnn),
        bih_f=uni(ks[3], (3 * H,), bound_rnn),
        bhh_f=uni(ks[4], (3 * H,), bound_rnn),
        # backward-direction GRU
        wih_b=uni(ks[5], (3 * H, E), bound_rnn),
        whh_b=uni(ks[6], (3 * H, H), bound_rnn),
        bih_b=uni(ks[7], (3 * H,), bound_rnn),
        bhh_b=uni(ks[8], (3 * H,), bound_rnn),
        # projector: Linear(2E, hidden_size)
        proj_w=uni(ks[9], (hidden_size, 2 * E), bound_proj),
        proj_b=uni(ks[10], (hidden_size,), bound_proj),
    )


def context_encoder_forward(inputs, lengths, mask, params):
    """inputs: (B,S) int32 token ids; lengths: (B,) int32; mask: (B,S) (unused, as in PyTorch)."""
    del mask  # only `lengths` drive the packed-sequence semantics in the reference code
    emb_table = params['embedding']
    B, S = inputs.shape
    E = emb_table.shape[1]
    H = E
    Hout = params['proj_w'].shape[0]

    embed = emb_table[inputs]                                   # (B, S, E) return value
    # dropout p=0.0 -> identity
    # Gather directly in time-major-flat order (row t*B + b) -> no float HBM transpose.
    x_flat = emb_table[jnp.transpose(inputs).reshape(-1)].astype(jnp.float32)  # (S*B, E)

    len2d = lengths.astype(jnp.int32).reshape(B, 1)
    wp = params['proj_w'].T                                     # (2H, Hout)

    args = (
        x_flat, len2d,
        params['wih_f'].T, params['whh_f'].T,
        params['bih_f'].reshape(1, -1), params['bhh_f'].reshape(1, -1),
        params['wih_b'].T, params['whh_b'].T,
        params['bih_b'].reshape(1, -1), params['bhh_b'].reshape(1, -1),
        wp[:H, :], wp[H:, :], params['proj_b'].reshape(1, -1),
    )

    out_flat, hid = pl.pallas_call(
        _context_gru_kernel,
        out_shape=(jax.ShapeDtypeStruct((S * B, Hout), jnp.float32),
                   jax.ShapeDtypeStruct((B, Hout), jnp.float32)),
        in_specs=[pl.BlockSpec(memory_space=pltpu.MemorySpace.VMEM)] * len(args),
        out_specs=(pl.BlockSpec(memory_space=pltpu.MemorySpace.VMEM),
                   pl.BlockSpec(memory_space=pltpu.MemorySpace.VMEM)),
    )(*args)

    # Module API requires batch-first output; this transpose is of a tiny (B,S,Hout)
    # tensor and could be fused into the consumer at production sizes.
    context_outputs = jnp.transpose(out_flat.reshape(S, B, Hout), (1, 0, 2))  # (B,S,Hout)
    context_hidden = hid[None, :, :]                                          # (1,B,Hout)
    return embed, context_outputs, context_hidden


def _reference_forward(inputs, lengths, params):
    """Pure-JAX reference of the same math, for a numerical sanity check."""
    HIGH = jax.lax.Precision.HIGHEST
    embed = params['embedding'][inputs]
    B, S, E = embed.shape
    H = E

    def run_dir(wih, whh, bih, bhh, reverse):
        def step(h, t):
            xt = embed[:, t, :]
            gi = jnp.dot(xt, wih.T, precision=HIGH) + bih
            gh = jnp.dot(h, whh.T, precision=HIGH) + bhh
            r = jax.nn.sigmoid(gi[:, :H] + gh[:, :H])
            z = jax.nn.sigmoid(gi[:, H:2 * H] + gh[:, H:2 * H])
            n = jnp.tanh(gi[:, 2 * H:] + r * gh[:, 2 * H:])
            h_new = (1.0 - z) * n + z * h
            valid = (t < lengths)[:, None]
            h_next = jnp.where(valid, h_new, h)
            return h_next, jnp.where(valid, h_next, 0.0)

        ts = jnp.arange(S)
        if reverse:
            ts = ts[::-1]
        h_last, outs = jax.lax.scan(step, jnp.zeros((B, H), jnp.float32), ts)
        if reverse:
            outs = outs[::-1]
        return jnp.transpose(outs, (1, 0, 2)), h_last

    out_f, h_f = run_dir(params['wih_f'], params['whh_f'], params['bih_f'], params['bhh_f'], False)
    out_b, h_b = run_dir(params['wih_b'], params['whh_b'], params['bih_b'], params['bhh_b'], True)
    rnn_out = jnp.concatenate([out_f, out_b], -1)
    hid = jnp.concatenate([h_f, h_b], -1)
    W, b = params['proj_w'], params['proj_b']
    ctx_out = jnp.dot(rnn_out, W.T, precision=HIGH) + b
    ctx_hid = (jnp.dot(hid, W.T, precision=HIGH) + b)[None]
    return embed, ctx_out, ctx_hid


if __name__ == "__main__":
    key = jax.random.PRNGKey(0)
    k_param, k_tok = jax.random.split(key)

    input_size = 50     # vocab size
    embedding_dim = 32  # E; per-direction GRU hidden = 32; bidirectional GRU hidden = 64
    hidden_size = 32    # projector output size
    B, S = 2, 8

    params = make_params(k_param, input_size, embedding_dim, hidden_size)

    lengths = jnp.array([8, 5], dtype=jnp.int32)  # sorted descending (packed-sequence convention)
    tok = jax.random.randint(k_tok, (B, S), 1, input_size, dtype=jnp.int32)
    pos = jnp.arange(S)[None, :]
    mask = (pos < lengths[:, None]).astype(jnp.int32)
    inputs = tok * mask  # positions past `lengths` hold PAD_token (= 0)

    embed, ctx_out, ctx_hid = context_encoder_forward(inputs, lengths, mask, params)
    jax.block_until_ready((embed, ctx_out, ctx_hid))

    # sanity-check the Pallas kernel against a pure-JAX reference of the same math
    r_embed, r_out, r_hid = _reference_forward(inputs, lengths, params)
    np.testing.assert_allclose(np.asarray(embed), np.asarray(r_embed), rtol=1e-5, atol=1e-5)
    np.testing.assert_allclose(np.asarray(ctx_out), np.asarray(r_out), rtol=2e-3, atol=2e-3)
    np.testing.assert_allclose(np.asarray(ctx_hid), np.asarray(r_hid), rtol=2e-3, atol=2e-3)

    assert embed.shape == (B, S, embedding_dim)
    assert ctx_out.shape == (B, S, hidden_size)
    assert ctx_hid.shape == (1, B, hidden_size)
    print("KERNEL_OK")
</pallas_src>

<mosaic_0001>
module attributes {stable_mosaic.version = 11 : i64} {
  func.func @_context_gru_kernel(%arg0: memref<16x32xf32, #tpu.memory_space<vmem>>, %arg1: memref<2x1xi32, #tpu.memory_space<vmem>>, %arg2: memref<32x96xf32, #tpu.memory_space<vmem>>, %arg3: memref<32x96xf32, #tpu.memory_space<vmem>>, %arg4: memref<1x96xf32, #tpu.memory_space<vmem>>, %arg5: memref<1x96xf32, #tpu.memory_space<vmem>>, %arg6: memref<32x96xf32, #tpu.memory_space<vmem>>, %arg7: memref<32x96xf32, #tpu.memory_space<vmem>>, %arg8: memref<1x96xf32, #tpu.memory_space<vmem>>, %arg9: memref<1x96xf32, #tpu.memory_space<vmem>>, %arg10: memref<32x32xf32, #tpu.memory_space<vmem>>, %arg11: memref<32x32xf32, #tpu.memory_space<vmem>>, %arg12: memref<1x32xf32, #tpu.memory_space<vmem>>, %arg13: memref<16x32xf32, #tpu.memory_space<vmem>>, %arg14: memref<2x32xf32, #tpu.memory_space<vmem>>) attributes {dimension_semantics = [], scalar_prefetch = 0 : i64, scratch_operands = 0 : i64, tpu.core_type = #tpu.core_type<tc>} {
    %c0 = arith.constant 0 : index
    %c0_0 = arith.constant 0 : index
    %0 = vector.load %arg0[%c0, %c0_0] : memref<16x32xf32, #tpu.memory_space<vmem>>, vector<16x32xf32>
    %c0_1 = arith.constant 0 : index
    %c0_2 = arith.constant 0 : index
    %1 = vector.load %arg1[%c0_1, %c0_2] : memref<2x1xi32, #tpu.memory_space<vmem>>, vector<2x1xi32>
    %c0_3 = arith.constant 0 : index
    %c0_4 = arith.constant 0 : index
    %2 = vector.load %arg2[%c0_3, %c0_4] : memref<32x96xf32, #tpu.memory_space<vmem>>, vector<32x96xf32>
    %c0_5 = arith.constant 0 : index
    %c0_6 = arith.constant 0 : index
    %3 = vector.load %arg3[%c0_5, %c0_6] : memref<32x96xf32, #tpu.memory_space<vmem>>, vector<32x96xf32>
    %c0_7 = arith.constant 0 : index
    %c0_8 = arith.constant 0 : index
    %4 = vector.load %arg4[%c0_7, %c0_8] : memref<1x96xf32, #tpu.memory_space<vmem>>, vector<1x96xf32>
    %c0_9 = arith.constant 0 : index
    %c0_10 = arith.constant 0 : index
    %5 = vector.load %arg5[%c0_9, %c0_10] : memref<1x96xf32, #tpu.memory_space<vmem>>, vector<1x96xf32>
    %c0_11 = arith.constant 0 : index
    %c0_12 = arith.constant 0 : index
    %6 = vector.load %arg6[%c0_11, %c0_12] : memref<32x96xf32, #tpu.memory_space<vmem>>, vector<32x96xf32>
    %c0_13 = arith.constant 0 : index
    %c0_14 = arith.constant 0 : index
    %7 = vector.load %arg7[%c0_13, %c0_14] : memref<32x96xf32, #tpu.memory_space<vmem>>, vector<32x96xf32>
    %c0_15 = arith.constant 0 : index
    %c0_16 = arith.constant 0 : index
    %8 = vector.load %arg8[%c0_15, %c0_16] : memref<1x96xf32, #tpu.memory_space<vmem>>, vector<1x96xf32>
    %c0_17 = arith.constant 0 : index
    %c0_18 = arith.constant 0 : index
    %9 = vector.load %arg9[%c0_17, %c0_18] : memref<1x96xf32, #tpu.memory_space<vmem>>, vector<1x96xf32>
    %c0_19 = arith.constant 0 : index
    %c0_20 = arith.constant 0 : index
    %10 = vector.load %arg10[%c0_19, %c0_20] : memref<32x32xf32, #tpu.memory_space<vmem>>, vector<32x32xf32>
    %c0_21 = arith.constant 0 : index
    %c0_22 = arith.constant 0 : index
    %11 = vector.load %arg11[%c0_21, %c0_22] : memref<32x32xf32, #tpu.memory_space<vmem>>, vector<32x32xf32>
    %c0_23 = arith.constant 0 : index
    %c0_24 = arith.constant 0 : index
    %12 = vector.load %arg12[%c0_23, %c0_24] : memref<1x32xf32, #tpu.memory_space<vmem>>, vector<1x32xf32>
    %cst = arith.constant dense<0.000000e+00> : vector<16x96xf32>
    %13 = tpu.matmul %0, %2, %cst {dimension_numbers = #tpu.dot_dimension_numbers<[1], [0], [0], [1], [0, 0, 1, 1], [], []>} : vector<16x32xf32>, vector<32x96xf32>, vector<16x96xf32> -> vector<16x96xf32>
    %14 = vector.broadcast %4 : vector<1x96xf32> to vector<16x96xf32>
    %15 = arith.addf %13, %14 : vector<16x96xf32>
    %cst_25 = arith.constant dense<0.000000e+00> : vector<16x96xf32>
    %16 = tpu.matmul %0, %6, %cst_25 {dimension_numbers = #tpu.dot_dimension_numbers<[1], [0], [0], [1], [0, 0, 1, 1], [], []>} : vector<16x32xf32>, vector<32x96xf32>, vector<16x96xf32> -> vector<16x96xf32>
    %17 = vector.broadcast %8 : vector<1x96xf32> to vector<16x96xf32>
    %18 = arith.addf %16, %17 : vector<16x96xf32>
    %19 = vector.extract_strided_slice %15 {offsets = [0, 0], sizes = [16, 32], strides = [1, 1]} : vector<16x96xf32> to vector<16x32xf32>
    %20 = vector.extract_strided_slice %15 {offsets = [0, 32], sizes = [16, 32], strides = [1, 1]} : vector<16x96xf32> to vector<16x32xf32>
    %21 = vector.extract_strided_slice %15 {offsets = [0, 64], sizes = [16, 32], strides = [1, 1]} : vector<16x96xf32> to vector<16x32xf32>
    %22 = vector.extract_strided_slice %18 {offsets = [0, 0], sizes = [16, 32], strides = [1, 1]} : vector<16x96xf32> to vector<16x32xf32>
    %23 = vector.extract_strided_slice %18 {offsets = [0, 32], sizes = [16, 32], strides = [1, 1]} : vector<16x96xf32> to vector<16x32xf32>
    %24 = vector.extract_strided_slice %18 {offsets = [0, 64], sizes = [16, 32], strides = [1, 1]} : vector<16x96xf32> to vector<16x32xf32>
    %25 = tpu.iota {dimensions = array<i32: 1>} : vector<2x8xi32>
    %26 = vector.broadcast %1 : vector<2x1xi32> to vector<2x8xi32>
    %27 = arith.cmpi slt, %25, %26 : vector<2x8xi32>
    %cst_26 = arith.constant 0.000000e+00 : f32
    %28 = vector.broadcast %cst_26 : f32 to vector<2x32xf32>
    %cst_27 = arith.constant 0.000000e+00 : f32
    %29 = vector.broadcast %cst_27 : f32 to vector<2x32xf32>
    %cst_28 = arith.constant dense<0.000000e+00> : vector<2x96xf32>
    %30 = tpu.matmul %28, %3, %cst_28 {dimension_numbers = #tpu.dot_dimension_numbers<[1], [0], [0], [1], [0, 0, 1, 1], [], []>} : vector<2x32xf32>, vector<32x96xf32>, vector<2x96xf32> -> vector<2x96xf32>
    %31 = vector.broadcast %5 : vector<1x96xf32> to vector<2x96xf32>
    %32 = arith.addf %30, %31 : vector<2x96xf32>
    %33 = vector.extract_strided_slice %19 {offsets = [0, 0], sizes = [2, 32], strides = [1, 1]} : vector<16x32xf32> to vector<2x32xf32>
    %34 = vector.extract_strided_slice %32 {offsets = [0, 0], sizes = [2, 32], strides = [1, 1]} : vector<2x96xf32> to vector<2x32xf32>
    %35 = arith.addf %33, %34 : vector<2x32xf32>
    %36 = arith.negf %35 : vector<2x32xf32>
    %37 = math.exp %36 : vector<2x32xf32>
    %cst_29 = arith.constant 1.000000e+00 : f32
    %38 = vector.broadcast %cst_29 : f32 to vector<2x32xf32>
    %39 = arith.addf %38, %37 : vector<2x32xf32>
    %40 = arith.divf %38, %39 : vector<2x32xf32>
    %41 = vector.extract_strided_slice %20 {offsets = [0, 0], sizes = [2, 32], strides = [1, 1]} : vector<16x32xf32> to vector<2x32xf32>
    %42 = vector.extract_strided_slice %32 {offsets = [0, 32], sizes = [2, 32], strides = [1, 1]} : vector<2x96xf32> to vector<2x32xf32>
    %43 = arith.addf %41, %42 : vector<2x32xf32>
    %44 = arith.negf %43 : vector<2x32xf32>
    %45 = math.exp %44 : vector<2x32xf32>
    %cst_30 = arith.constant 1.000000e+00 : f32
    %46 = vector.broadcast %cst_30 : f32 to vector<2x32xf32>
    %47 = arith.addf %46, %45 : vector<2x32xf32>
    %48 = arith.divf %46, %47 : vector<2x32xf32>
    %49 = vector.extract_strided_slice %21 {offsets = [0, 0], sizes = [2, 32], strides = [1, 1]} : vector<16x32xf32> to vector<2x32xf32>
    %50 = vector.extract_strided_slice %32 {offsets = [0, 64], sizes = [2, 32], strides = [1, 1]} : vector<2x96xf32> to vector<2x32xf32>
    %51 = arith.mulf %40, %50 : vector<2x32xf32>
    %52 = arith.addf %49, %51 : vector<2x32xf32>
    %53 = math.tanh %52 : vector<2x32xf32>
    %cst_31 = arith.constant 1.000000e+00 : f32
    %54 = vector.broadcast %cst_31 : f32 to vector<2x32xf32>
    %55 = arith.subf %54, %48 : vector<2x32xf32>
    %56 = arith.mulf %55, %53 : vector<2x32xf32>
    %57 = arith.mulf %48, %28 : vector<2x32xf32>
    %58 = arith.addf %56, %57 : vector<2x32xf32>
    %59 = vector.extract_strided_slice %27 {offsets = [0, 0], sizes = [2, 1], strides = [1, 1]} : vector<2x8xi1> to vector<2x1xi1>
    %60 = vector.shape_cast %59 : vector<2x1xi1> to vector<2x1xi1>
    %61 = vector.broadcast %60 : vector<2x1xi1> to vector<2x32xi1>
    %62 = arith.select %61, %58, %28 : vector<2x32xi1>, vector<2x32xf32>
    %cst_32 = arith.constant 0.000000e+00 : f32
    %63 = vector.shape_cast %59 : vector<2x1xi1> to vector<2x1xi1>
    %64 = vector.broadcast %63 : vector<2x1xi1> to vector<2x32xi1>
    %65 = vector.broadcast %cst_32 : f32 to vector<2x32xf32>
    %66 = arith.select %64, %62, %65 : vector<2x32xi1>, vector<2x32xf32>
    %cst_33 = arith.constant dense<0.000000e+00> : vector<2x96xf32>
    %67 = tpu.matmul %29, %7, %cst_33 {dimension_numbers = #tpu.dot_dimension_numbers<[1], [0], [0], [1], [0, 0, 1, 1], [], []>} : vector<2x32xf32>, vector<32x96xf32>, vector<2x96xf32> -> vector<2x96xf32>
    %68 = vector.broadcast %9 : vector<1x96xf32> to vector<2x96xf32>
    %69 = arith.addf %67, %68 : vector<2x96xf32>
    %70 = vector.extract_strided_slice %22 {offsets = [14, 0], sizes = [2, 32], strides = [1, 1]} : vector<16x32xf32> to vector<2x32xf32>
    %71 = vector.extract_strided_slice %69 {offsets = [0, 0], sizes = [2, 32], strides = [1, 1]} : vector<2x96xf32> to vector<2x32xf32>
    %72 = arith.addf %70, %71 : vector<2x32xf32>
    %73 = arith.negf %72 : vector<2x32xf32>
    %74 = math.exp %73 : vector<2x32xf32>
    %cst_34 = arith.constant 1.000000e+00 : f32
    %75 = vector.broadcast %cst_34 : f32 to vector<2x32xf32>
    %76 = arith.addf %75, %74 : vector<2x32xf32>
    %77 = arith.divf %75, %76 : vector<2x32xf32>
    %78 = vector.extract_strided_slice %23 {offsets = [14, 0], sizes = [2, 32], strides = [1, 1]} : vector<16x32xf32> to vector<2x32xf32>
    %79 = vector.extract_strided_slice %69 {offsets = [0, 32], sizes = [2, 32], strides = [1, 1]} : vector<2x96xf32> to vector<2x32xf32>
    %80 = arith.addf %78, %79 : vector<2x32xf32>
    %81 = arith.negf %80 : vector<2x32xf32>
    %82 = math.exp %81 : vector<2x32xf32>
    %cst_35 = arith.constant 1.000000e+00 : f32
    %83 = vector.broadcast %cst_35 : f32 to vector<2x32xf32>
    %84 = arith.addf %83, %82 : vector<2x32xf32>
    %85 = arith.divf %83, %84 : vector<2x32xf32>
    %86 = vector.extract_strided_slice %24 {offsets = [14, 0], sizes = [2, 32], strides = [1, 1]} : vector<16x32xf32> to vector<2x32xf32>
    %87 = vector.extract_strided_slice %69 {offsets = [0, 64], sizes = [2, 32], strides = [1, 1]} : vector<2x96xf32> to vector<2x32xf32>
    %88 = arith.mulf %77, %87 : vector<2x32xf32>
    %89 = arith.addf %86, %88 : vector<2x32xf32>
    %90 = math.tanh %89 : vector<2x32xf32>
    %cst_36 = arith.constant 1.000000e+00 : f32
    %91 = vector.broadcast %cst_36 : f32 to vector<2x32xf32>
    %92 = arith.subf %91, %85 : vector<2x32xf32>
    %93 = arith.mulf %92, %90 : vector<2x32xf32>
    %94 = arith.mulf %85, %29 : vector<2x32xf32>
    %95 = arith.addf %93, %94 : vector<2x32xf32>
    %96 = vector.extract_strided_slice %27 {offsets = [0, 7], sizes = [2, 1], strides = [1, 1]} : vector<2x8xi1> to vector<2x1xi1>
    %97 = vector.shape_cast %96 : vector<2x1xi1> to vector<2x1xi1>
    %98 = vector.broadcast %97 : vector<2x1xi1> to vector<2x32xi1>
    %99 = arith.select %98, %95, %29 : vector<2x32xi1>, vector<2x32xf32>
    %cst_37 = arith.constant 0.000000e+00 : f32
    %100 = vector.shape_cast %96 : vector<2x1xi1> to vector<2x1xi1>
    %101 = vector.broadcast %100 : vector<2x1xi1> to vector<2x32xi1>
    %102 = vector.broadcast %cst_37 : f32 to vector<2x32xf32>
    %103 = arith.select %101, %99, %102 : vector<2x32xi1>, vector<2x32xf32>
    %cst_38 = arith.constant dense<0.000000e+00> : vector<2x96xf32>
    %104 = tpu.matmul %62, %3, %cst_38 {dimension_numbers = #tpu.dot_dimension_numbers<[1], [0], [0], [1], [0, 0, 1, 1], [], []>} : vector<2x32xf32>, vector<32x96xf32>, vector<2x96xf32> -> vector<2x96xf32>
    %105 = vector.broadcast %5 : vector<1x96xf32> to vector<2x96xf32>
    %106 = arith.addf %104, %105 : vector<2x96xf32>
    %107 = vector.extract_strided_slice %19 {offsets = [2, 0], sizes = [2, 32], strides = [1, 1]} : vector<16x32xf32> to vector<2x32xf32>
    %108 = vector.extract_strided_slice %106 {offsets = [0, 0], sizes = [2, 32], strides = [1, 1]} : vector<2x96xf32> to vector<2x32xf32>
    %109 = arith.addf %107, %108 : vector<2x32xf32>
    %110 = arith.negf %109 : vector<2x32xf32>
    %111 = math.exp %110 : vector<2x32xf32>
    %cst_39 = arith.constant 1.000000e+00 : f32
    %112 = vector.broadcast %cst_39 : f32 to vector<2x32xf32>
    %113 = arith.addf %112, %111 : vector<2x32xf32>
    %114 = arith.divf %112, %113 : vector<2x32xf32>
    %115 = vector.extract_strided_slice %20 {offsets = [2, 0], sizes = [2, 32], strides = [1, 1]} : vector<16x32xf32> to vector<2x32xf32>
    %116 = vector.extract_strided_slice %106 {offsets = [0, 32], sizes = [2, 32], strides = [1, 1]} : vector<2x96xf32> to vector<2x32xf32>
    %117 = arith.addf %115, %116 : vector<2x32xf32>
    %118 = arith.negf %117 : vector<2x32xf32>
    %119 = math.exp %118 : vector<2x32xf32>
    %cst_40 = arith.constant 1.000000e+00 : f32
    %120 = vector.broadcast %cst_40 : f32 to vector<2x32xf32>
    %121 = arith.addf %120, %119 : vector<2x32xf32>
    %122 = arith.divf %120, %121 : vector<2x32xf32>
    %123 = vector.extract_strided_slice %21 {offsets = [2, 0], sizes = [2, 32], strides = [1, 1]} : vector<16x32xf32> to vector<2x32xf32>
    %124 = vector.extract_strided_slice %106 {offsets = [0, 64], sizes = [2, 32], strides = [1, 1]} : vector<2x96xf32> to vector<2x32xf32>
    %125 = arith.mulf %114, %124 : vector<2x32xf32>
    %126 = arith.addf %123, %125 : vector<2x32xf32>
    %127 = math.tanh %126 : vector<2x32xf32>
    %cst_41 = arith.constant 1.000000e+00 : f32
    %128 = vector.broadcast %cst_41 : f32 to vector<2x32xf32>
    %129 = arith.subf %128, %122 : vector<2x32xf32>
    %130 = arith.mulf %129, %127 : vector<2x32xf32>
    %131 = arith.mulf %122, %62 : vector<2x32xf32>
    %132 = arith.addf %130, %131 : vector<2x32xf32>
    %133 = vector.extract_strided_slice %27 {offsets = [0, 1], sizes = [2, 1], strides = [1, 1]} : vector<2x8xi1> to vector<2x1xi1>
    %134 = vector.shape_cast %133 : vector<2x1xi1> to vector<2x1xi1>
    %135 = vector.broadcast %134 : vector<2x1xi1> to vector<2x32xi1>
    %136 = arith.select %135, %132, %62 : vector<2x32xi1>, vector<2x32xf32>
    %cst_42 = arith.constant 0.000000e+00 : f32
    %137 = vector.shape_cast %133 : vector<2x1xi1> to vector<2x1xi1>
    %138 = vector.broadcast %137 : vector<2x1xi1> to vector<2x32xi1>
    %139 = vector.broadcast %cst_42 : f32 to vector<2x32xf32>
    %140 = arith.select %138, %136, %139 : vector<2x32xi1>, vector<2x32xf32>
    %cst_43 = arith.constant dense<0.000000e+00> : vector<2x96xf32>
    %141 = tpu.matmul %99, %7, %cst_43 {dimension_numbers = #tpu.dot_dimension_numbers<[1], [0], [0], [1], [0, 0, 1, 1], [], []>} : vector<2x32xf32>, vector<32x96xf32>, vector<2x96xf32> -> vector<2x96xf32>
    %142 = vector.broadcast %9 : vector<1x96xf32> to vector<2x96xf32>
    %143 = arith.addf %141, %142 : vector<2x96xf32>
    %144 = vector.extract_strided_slice %22 {offsets = [12, 0], sizes = [2, 32], strides = [1, 1]} : vector<16x32xf32> to vector<2x32xf32>
    %145 = vector.extract_strided_slice %143 {offsets = [0, 0], sizes = [2, 32], strides = [1, 1]} : vector<2x96xf32> to vector<2x32xf32>
    %146 = arith.addf %144, %145 : vector<2x32xf32>
    %147 = arith.negf %146 : vector<2x32xf32>
    %148 = math.exp %147 : vector<2x32xf32>
    %cst_44 = arith.constant 1.000000e+00 : f32
    %149 = vector.broadcast %cst_44 : f32 to vector<2x32xf32>
    %150 = arith.addf %149, %148 : vector<2x32xf32>
    %151 = arith.divf %149, %150 : vector<2x32xf32>
    %152 = vector.extract_strided_slice %23 {offsets = [12, 0], sizes = [2, 32], strides = [1, 1]} : vector<16x32xf32> to vector<2x32xf32>
    %153 = vector.extract_strided_slice %143 {offsets = [0, 32], sizes = [2, 32], strides = [1, 1]} : vector<2x96xf32> to vector<2x32xf32>
    %154 = arith.addf %152, %153 : vector<2x32xf32>
    %155 = arith.negf %154 : vector<2x32xf32>
    %156 = math.exp %155 : vector<2x32xf32>
    %cst_45 = arith.constant 1.000000e+00 : f32
    %157 = vector.broadcast %cst_45 : f32 to vector<2x32xf32>
    %158 = arith.addf %157, %156 : vector<2x32xf32>
    %159 = arith.divf %157, %158 : vector<2x32xf32>
    %160 = vector.extract_strided_slice %24 {offsets = [12, 0], sizes = [2, 32], strides = [1, 1]} : vector<16x32xf32> to vector<2x32xf32>
    %161 = vector.extract_strided_slice %143 {offsets = [0, 64], sizes = [2, 32], strides = [1, 1]} : vector<2x96xf32> to vector<2x32xf32>
    %162 = arith.mulf %151, %161 : vector<2x32xf32>
    %163 = arith.addf %160, %162 : vector<2x32xf32>
    %164 = math.tanh %163 : vector<2x32xf32>
    %cst_46 = arith.constant 1.000000e+00 : f32
    %165 = vector.broadcast %cst_46 : f32 to vector<2x32xf32>
    %166 = arith.subf %165, %159 : vector<2x32xf32>
    %167 = arith.mulf %166, %164 : vector<2x32xf32>
    %168 = arith.mulf %159, %99 : vector<2x32xf32>
    %169 = arith.addf %167, %168 : vector<2x32xf32>
    %170 = vector.extract_strided_slice %27 {offsets = [0, 6], sizes = [2, 1], strides = [1, 1]} : vector<2x8xi1> to vector<2x1xi1>
    %171 = vector.shape_cast %170 : vector<2x1xi1> to vector<2x1xi1>
    %172 = vector.broadcast %171 : vector<2x1xi1> to vector<2x32xi1>
    %173 = arith.select %172, %169, %99 : vector<2x32xi1>, vector<2x32xf32>
    %cst_47 = arith.constant 0.000000e+00 : f32
    %174 = vector.shape_cast %170 : vector<2x1xi1> to vector<2x1xi1>
    %175 = vector.broadcast %174 : vector<2x1xi1> to vector<2x32xi1>
    %176 = vector.broadcast %cst_47 : f32 to vector<2x32xf32>
    %177 = arith.select %175, %173, %176 : vector<2x32xi1>, vector<2x32xf32>
    %cst_48 = arith.constant dense<0.000000e+00> : vector<2x96xf32>
    %178 = tpu.matmul %136, %3, %cst_48 {dimension_numbers = #tpu.dot_dimension_numbers<[1], [0], [0], [1], [0, 0, 1, 1], [], []>} : vector<2x32xf32>, vector<32x96xf32>, vector<2x96xf32> -> vector<2x96xf32>
    %179 = vector.broadcast %5 : vector<1x96xf32> to vector<2x96xf32>
    %180 = arith.addf %178, %179 : vector<2x96xf32>
    %181 = vector.extract_strided_slice %19 {offsets = [4, 0], sizes = [2, 32], strides = [1, 1]} : vector<16x32xf32> to vector<2x32xf32>
    %182 = vector.extract_strided_slice %180 {offsets = [0, 0], sizes = [2, 32], strides = [1, 1]} : vector<2x96xf32> to vector<2x32xf32>
    %183 = arith.addf %181, %182 : vector<2x32xf32>
    %184 = arith.negf %183 : vector<2x32xf32>
    %185 = math.exp %184 : vector<2x32xf32>
    %cst_49 = arith.constant 1.000000e+00 : f32
    %186 = vector.broadcast %cst_49 : f32 to vector<2x32xf32>
    %187 = arith.addf %186, %185 : vector<2x32xf32>
    %188 = arith.divf %186, %187 : vector<2x32xf32>
    %189 = vector.extract_strided_slice %20 {offsets = [4, 0], sizes = [2, 32], strides = [1, 1]} : vector<16x32xf32> to vector<2x32xf32>
    %190 = vector.extract_strided_slice %180 {offsets = [0, 32], sizes = [2, 32], strides = [1, 1]} : vector<2x96xf32> to vector<2x32xf32>
    %191 = arith.addf %189, %190 : vector<2x32xf32>
    %192 = arith.negf %191 : vector<2x32xf32>
    %193 = math.exp %192 : vector<2x32xf32>
    %cst_50 = arith.constant 1.000000e+00 : f32
    %194 = vector.broadcast %cst_50 : f32 to vector<2x32xf32>
    %195 = arith.addf %194, %193 : vector<2x32xf32>
    %196 = arith.divf %194, %195 : vector<2x32xf32>
    %197 = vector.extract_strided_slice %21 {offsets = [4, 0], sizes = [2, 32], strides = [1, 1]} : vector<16x32xf32> to vector<2x32xf32>
    %198 = vector.extract_strided_slice %180 {offsets = [0, 64], sizes = [2, 32], strides = [1, 1]} : vector<2x96xf32> to vector<2x32xf32>
    %199 = arith.mulf %188, %198 : vector<2x32xf32>
    %200 = arith.addf %197, %199 : vector<2x32xf32>
    %201 = math.tanh %200 : vector<2x32xf32>
    %cst_51 = arith.constant 1.000000e+00 : f32
    %202 = vector.broadcast %cst_51 : f32 to vector<2x32xf32>
    %203 = arith.subf %202, %196 : vector<2x32xf32>
    %204 = arith.mulf %203, %201 : vector<2x32xf32>
    %205 = arith.mulf %196, %136 : vector<2x32xf32>
    %206 = arith.addf %204, %205 : vector<2x32xf32>
    %207 = vector.extract_strided_slice %27 {offsets = [0, 2], sizes = [2, 1], strides = [1, 1]} : vector<2x8xi1> to vector<2x1xi1>
    %208 = vector.shape_cast %207 : vector<2x1xi1> to vector<2x1xi1>
    %209 = vector.broadcast %208 : vector<2x1xi1> to vector<2x32xi1>
    %210 = arith.select %209, %206, %136 : vector<2x32xi1>, vector<2x32xf32>
    %cst_52 = arith.constant 0.000000e+00 : f32
    %211 = vector.shape_cast %207 : vector<2x1xi1> to vector<2x1xi1>
    %212 = vector.broadcast %211 : vector<2x1xi1> to vector<2x32xi1>
    %213 = vector.broadcast %cst_52 : f32 to vector<2x32xf32>
    %214 = arith.select %212, %210, %213 : vector<2x32xi1>, vector<2x32xf32>
    %cst_53 = arith.constant dense<0.000000e+00> : vector<2x96xf32>
    %215 = tpu.matmul %173, %7, %cst_53 {dimension_numbers = #tpu.dot_dimension_numbers<[1], [0], [0], [1], [0, 0, 1, 1], [], []>} : vector<2x32xf32>, vector<32x96xf32>, vector<2x96xf32> -> vector<2x96xf32>
    %216 = vector.broadcast %9 : vector<1x96xf32> to vector<2x96xf32>
    %217 = arith.addf %215, %216 : vector<2x96xf32>
    %218 = vector.extract_strided_slice %22 {offsets = [10, 0], sizes = [2, 32], strides = [1, 1]} : vector<16x32xf32> to vector<2x32xf32>
    %219 = vector.extract_strided_slice %217 {offsets = [0, 0], sizes = [2, 32], strides = [1, 1]} : vector<2x96xf32> to vector<2x32xf32>
    %220 = arith.addf %218, %219 : vector<2x32xf32>
    %221 = arith.negf %220 : vector<2x32xf32>
    %222 = math.exp %221 : vector<2x32xf32>
    %cst_54 = arith.constant 1.000000e+00 : f32
    %223 = vector.broadcast %cst_54 : f32 to vector<2x32xf32>
    %224 = arith.addf %223, %222 : vector<2x32xf32>
    %225 = arith.divf %223, %224 : vector<2x32xf32>
    %226 = vector.extract_strided_slice %23 {offsets = [10, 0], sizes = [2, 32], strides = [1, 1]} : vector<16x32xf32> to vector<2x32xf32>
    %227 = vector.extract_strided_slice %217 {offsets = [0, 32], sizes = [2, 32], strides = [1, 1]} : vector<2x96xf32> to vector<2x32xf32>
    %228 = arith.addf %226, %227 : vector<2x32xf32>
    %229 = arith.negf %228 : vector<2x32xf32>
    %230 = math.exp %229 : vector<2x32xf32>
    %cst_55 = arith.constant 1.000000e+00 : f32
    %231 = vector.broadcast %cst_55 : f32 to vector<2x32xf32>
    %232 = arith.addf %231, %230 : vector<2x32xf32>
    %233 = arith.divf %231, %232 : vector<2x32xf32>
    %234 = vector.extract_strided_slice %24 {offsets = [10, 0], sizes = [2, 32], strides = [1, 1]} : vector<16x32xf32> to vector<2x32xf32>
    %235 = vector.extract_strided_slice %217 {offsets = [0, 64], sizes = [2, 32], strides = [1, 1]} : vector<2x96xf32> to vector<2x32xf32>
    %236 = arith.mulf %225, %235 : vector<2x32xf32>
    %237 = arith.addf %234, %236 : vector<2x32xf32>
    %238 = math.tanh %237 : vector<2x32xf32>
    %cst_56 = arith.constant 1.000000e+00 : f32
    %239 = vector.broadcast %cst_56 : f32 to vector<2x32xf32>
    %240 = arith.subf %239, %233 : vector<2x32xf32>
    %241 = arith.mulf %240, %238 : vector<2x32xf32>
    %242 = arith.mulf %233, %173 : vector<2x32xf32>
    %243 = arith.addf %241, %242 : vector<2x32xf32>
    %244 = vector.extract_strided_slice %27 {offsets = [0, 5], sizes = [2, 1], strides = [1, 1]} : vector<2x8xi1> to vector<2x1xi1>
    %245 = vector.shape_cast %244 : vector<2x1xi1> to vector<2x1xi1>
    %246 = vector.broadcast %245 : vector<2x1xi1> to vector<2x32xi1>
    %247 = arith.select %246, %243, %173 : vector<2x32xi1>, vector<2x32xf32>
    %cst_57 = arith.constant 0.000000e+00 : f32
    %248 = vector.shape_cast %244 : vector<2x1xi1> to vector<2x1xi1>
    %249 = vector.broadcast %248 : vector<2x1xi1> to vector<2x32xi1>
    %250 = vector.broadcast %cst_57 : f32 to vector<2x32xf32>
    %251 = arith.select %249, %247, %250 : vector<2x32xi1>, vector<2x32xf32>
    %cst_58 = arith.constant dense<0.000000e+00> : vector<2x96xf32>
    %252 = tpu.matmul %210, %3, %cst_58 {dimension_numbers = #tpu.dot_dimension_numbers<[1], [0], [0], [1], [0, 0, 1, 1], [], []>} : vector<2x32xf32>, vector<32x96xf32>, vector<2x96xf32> -> vector<2x96xf32>
    %253 = vector.broadcast %5 : vector<1x96xf32> to vector<2x96xf32>
    %254 = arith.addf %252, %253 : vector<2x96xf32>
    %255 = vector.extract_strided_slice %19 {offsets = [6, 0], sizes = [2, 32], strides = [1, 1]} : vector<16x32xf32> to vector<2x32xf32>
    %256 = vector.extract_strided_slice %254 {offsets = [0, 0], sizes = [2, 32], strides = [1, 1]} : vector<2x96xf32> to vector<2x32xf32>
    %257 = arith.addf %255, %256 : vector<2x32xf32>
    %258 = arith.negf %257 : vector<2x32xf32>
    %259 = math.exp %258 : vector<2x32xf32>
    %cst_59 = arith.constant 1.000000e+00 : f32
    %260 = vector.broadcast %cst_59 : f32 to vector<2x32xf32>
    %261 = arith.addf %260, %259 : vector<2x32xf32>
    %262 = arith.divf %260, %261 : vector<2x32xf32>
    %263 = vector.extract_strided_slice %20 {offsets = [6, 0], sizes = [2, 32], strides = [1, 1]} : vector<16x32xf32> to vector<2x32xf32>
    %264 = vector.extract_strided_slice %254 {offsets = [0, 32], sizes = [2, 32], strides = [1, 1]} : vector<2x96xf32> to vector<2x32xf32>
    %265 = arith.addf %263, %264 : vector<2x32xf32>
    %266 = arith.negf %265 : vector<2x32xf32>
    %267 = math.exp %266 : vector<2x32xf32>
    %cst_60 = arith.constant 1.000000e+00 : f32
    %268 = vector.broadcast %cst_60 : f32 to vector<2x32xf32>
    %269 = arith.addf %268, %267 : vector<2x32xf32>
    %270 = arith.divf %268, %269 : vector<2x32xf32>
    %271 = vector.extract_strided_slice %21 {offsets = [6, 0], sizes = [2, 32], strides = [1, 1]} : vector<16x32xf32> to vector<2x32xf32>
    %272 = vector.extract_strided_slice %254 {offsets = [0, 64], sizes = [2, 32], strides = [1, 1]} : vector<2x96xf32> to vector<2x32xf32>
    %273 = arith.mulf %262, %272 : vector<2x32xf32>
    %274 = arith.addf %271, %273 : vector<2x32xf32>
    %275 = math.tanh %274 : vector<2x32xf32>
    %cst_61 = arith.constant 1.000000e+00 : f32
    %276 = vector.broadcast %cst_61 : f32 to vector<2x32xf32>
    %277 = arith.subf %276, %270 : vector<2x32xf32>
    %278 = arith.mulf %277, %275 : vector<2x32xf32>
    %279 = arith.mulf %270, %210 : vector<2x32xf32>
    %280 = arith.addf %278, %279 : vector<2x32xf32>
    %281 = vector.extract_strided_slice %27 {offsets = [0, 3], sizes = [2, 1], strides = [1, 1]} : vector<2x8xi1> to vector<2x1xi1>
    %282 = vector.shape_cast %281 : vector<2x1xi1> to vector<2x1xi1>
    %283 = vector.broadcast %282 : vector<2x1xi1> to vector<2x32xi1>
    %284 = arith.select %283, %280, %210 : vector<2x32xi1>, vector<2x32xf32>
    %cst_62 = arith.constant 0.000000e+00 : f32
    %285 = vector.shape_cast %281 : vector<2x1xi1> to vector<2x1xi1>
    %286 = vector.broadcast %285 : vector<2x1xi1> to vector<2x32xi1>
    %287 = vector.broadcast %cst_62 : f32 to vector<2x32xf32>
    %288 = arith.select %286, %284, %287 : vector<2x32xi1>, vector<2x32xf32>
    %cst_63 = arith.constant dense<0.000000e+00> : vector<2x96xf32>
    %289 = tpu.matmul %247, %7, %cst_63 {dimension_numbers = #tpu.dot_dimension_numbers<[1], [0], [0], [1], [0, 0, 1, 1], [], []>} : vector<2x32xf32>, vector<32x96xf32>, vector<2x96xf32> -> vector<2x96xf32>
    %290 = vector.broadcast %9 : vector<1x96xf32> to vector<2x96xf32>
    %291 = arith.addf %289, %290 : vector<2x96xf32>
    %292 = vector.extract_strided_slice %22 {offsets = [8, 0], sizes = [2, 32], strides = [1, 1]} : vector<16x32xf32> to vector<2x32xf32>
    %293 = vector.extract_strided_slice %291 {offsets = [0, 0], sizes = [2, 32], strides = [1, 1]} : vector<2x96xf32> to vector<2x32xf32>
    %294 = arith.addf %292, %293 : vector<2x32xf32>
    %295 = arith.negf %294 : vector<2x32xf32>
    %296 = math.exp %295 : vector<2x32xf32>
    %cst_64 = arith.constant 1.000000e+00 : f32
    %297 = vector.broadcast %cst_64 : f32 to vector<2x32xf32>
    %298 = arith.addf %297, %296 : vector<2x32xf32>
    %299 = arith.divf %297, %298 : vector<2x32xf32>
    %300 = vector.extract_strided_slice %23 {offsets = [8, 0], sizes = [2, 32], strides = [1, 1]} : vector<16x32xf32> to vector<2x32xf32>
    %301 = vector.extract_strided_slice %291 {offsets = [0, 32], sizes = [2, 32], strides = [1, 1]} : vector<2x96xf32> to vector<2x32xf32>
    %302 = arith.addf %300, %301 : vector<2x32xf32>
    %303 = arith.negf %302 : vector<2x32xf32>
    %304 = math.exp %303 : vector<2x32xf32>
    %cst_65 = arith.constant 1.000000e+00 : f32
    %305 = vector.broadcast %cst_65 : f32 to vector<2x32xf32>
    %306 = arith.addf %305, %304 : vector<2x32xf32>
    %307 = arith.divf %305, %306 : vector<2x32xf32>
    %308 = vector.extract_strided_slice %24 {offsets = [8, 0], sizes = [2, 32], strides = [1, 1]} : vector<16x32xf32> to vector<2x32xf32>
    %309 = vector.extract_strided_slice %291 {offsets = [0, 64], sizes = [2, 32], strides = [1, 1]} : vector<2x96xf32> to vector<2x32xf32>
    %310 = arith.mulf %299, %309 : vector<2x32xf32>
    %311 = arith.addf %308, %310 : vector<2x32xf32>
    %312 = math.tanh %311 : vector<2x32xf32>
    %cst_66 = arith.constant 1.000000e+00 : f32
    %313 = vector.broadcast %cst_66 : f32 to vector<2x32xf32>
    %314 = arith.subf %313, %307 : vector<2x32xf32>
    %315 = arith.mulf %314, %312 : vector<2x32xf32>
    %316 = arith.mulf %307, %247 : vector<2x32xf32>
    %317 = arith.addf %315, %316 : vector<2x32xf32>
    %318 = vector.extract_strided_slice %27 {offsets = [0, 4], sizes = [2, 1], strides = [1, 1]} : vector<2x8xi1> to vector<2x1xi1>
    %319 = vector.shape_cast %318 : vector<2x1xi1> to vector<2x1xi1>
    %320 = vector.broadcast %319 : vector<2x1xi1> to vector<2x32xi1>
    %321 = arith.select %320, %317, %247 : vector<2x32xi1>, vector<2x32xf32>
    %cst_67 = arith.constant 0.000000e+00 : f32
    %322 = vector.shape_cast %318 : vector<2x1xi1> to vector<2x1xi1>
    %323 = vector.broadcast %322 : vector<2x1xi1> to vector<2x32xi1>
    %324 = vector.broadcast %cst_67 : f32 to vector<2x32xf32>
    %325 = arith.select %323, %321, %324 : vector<2x32xi1>, vector<2x32xf32>
    %cst_68 = arith.constant dense<0.000000e+00> : vector<2x96xf32>
    %326 = tpu.matmul %284, %3, %cst_68 {dimension_numbers = #tpu.dot_dimension_numbers<[1], [0], [0], [1], [0, 0, 1, 1], [], []>} : vector<2x32xf32>, vector<32x96xf32>, vector<2x96xf32> -> vector<2x96xf32>
    %327 = vector.broadcast %5 : vector<1x96xf32> to vector<2x96xf32>
    %328 = arith.addf %326, %327 : vector<2x96xf32>
    %329 = vector.extract_strided_slice %19 {offsets = [8, 0], sizes = [2, 32], strides = [1, 1]} : vector<16x32xf32> to vector<2x32xf32>
    %330 = vector.extract_strided_slice %328 {offsets = [0, 0], sizes = [2, 32], strides = [1, 1]} : vector<2x96xf32> to vector<2x32xf32>
    %331 = arith.addf %329, %330 : vector<2x32xf32>
    %332 = arith.negf %331 : vector<2x32xf32>
    %333 = math.exp %332 : vector<2x32xf32>
    %cst_69 = arith.constant 1.000000e+00 : f32
    %334 = vector.broadcast %cst_69 : f32 to vector<2x32xf32>
    %335 = arith.addf %334, %333 : vector<2x32xf32>
    %336 = arith.divf %334, %335 : vector<2x32xf32>
    %337 = vector.extract_strided_slice %20 {offsets = [8, 0], sizes = [2, 32], strides = [1, 1]} : vector<16x32xf32> to vector<2x32xf32>
    %338 = vector.extract_strided_slice %328 {offsets = [0, 32], sizes = [2, 32], strides = [1, 1]} : vector<2x96xf32> to vector<2x32xf32>
    %339 = arith.addf %337, %338 : vector<2x32xf32>
    %340 = arith.negf %339 : vector<2x32xf32>
    %341 = math.exp %340 : vector<2x32xf32>
    %cst_70 = arith.constant 1.000000e+00 : f32
    %342 = vector.broadcast %cst_70 : f32 to vector<2x32xf32>
    %343 = arith.addf %342, %341 : vector<2x32xf32>
    %344 = arith.divf %342, %343 : vector<2x32xf32>
    %345 = vector.extract_strided_slice %21 {offsets = [8, 0], sizes = [2, 32], strides = [1, 1]} : vector<16x32xf32> to vector<2x32xf32>
    %346 = vector.extract_strided_slice %328 {offsets = [0, 64], sizes = [2, 32], strides = [1, 1]} : vector<2x96xf32> to vector<2x32xf32>
    %347 = arith.mulf %336, %346 : vector<2x32xf32>
    %348 = arith.addf %345, %347 : vector<2x32xf32>
    %349 = math.tanh %348 : vector<2x32xf32>
    %cst_71 = arith.constant 1.000000e+00 : f32
    %350 = vector.broadcast %cst_71 : f32 to vector<2x32xf32>
    %351 = arith.subf %350, %344 : vector<2x32xf32>
    %352 = arith.mulf %351, %349 : vector<2x32xf32>
    %353 = arith.mulf %344, %284 : vector<2x32xf32>
    %354 = arith.addf %352, %353 : vector<2x32xf32>
    %355 = vector.extract_strided_slice %27 {offsets = [0, 4], sizes = [2, 1], strides = [1, 1]} : vector<2x8xi1> to vector<2x1xi1>
    %356 = vector.shape_cast %355 : vector<2x1xi1> to vector<2x1xi1>
    %357 = vector.broadcast %356 : vector<2x1xi1> to vector<2x32xi1>
    %358 = arith.select %357, %354, %284 : vector<2x32xi1>, vector<2x32xf32>
    %cst_72 = arith.constant 0.000000e+00 : f32
    %359 = vector.shape_cast %355 : vector<2x1xi1> to vector<2x1xi1>
    %360 = vector.broadcast %359 : vector<2x1xi1> to vector<2x32xi1>
    %361 = vector.broadcast %cst_72 : f32 to vector<2x32xf32>
    %362 = arith.select %360, %358, %361 : vector<2x32xi1>, vector<2x32xf32>
    %cst_73 = arith.constant dense<0.000000e+00> : vector<2x96xf32>
    %363 = tpu.matmul %321, %7, %cst_73 {dimension_numbers = #tpu.dot_dimension_numbers<[1], [0], [0], [1], [0, 0, 1, 1], [], []>} : vector<2x32xf32>, vector<32x96xf32>, vector<2x96xf32> -> vector<2x96xf32>
    %364 = vector.broadcast %9 : vector<1x96xf32> to vector<2x96xf32>
    %365 = arith.addf %363, %364 : vector<2x96xf32>
    %366 = vector.extract_strided_slice %22 {offsets = [6, 0], sizes = [2, 32], strides = [1, 1]} : vector<16x32xf32> to vector<2x32xf32>
    %367 = vector.extract_strided_slice %365 {offsets = [0, 0], sizes = [2, 32], strides = [1, 1]} : vector<2x96xf32> to vector<2x32xf32>
    %368 = arith.addf %366, %367 : vector<2x32xf32>
    %369 = arith.negf %368 : vector<2x32xf32>
    %370 = math.exp %369 : vector<2x32xf32>
    %cst_74 = arith.constant 1.000000e+00 : f32
    %371 = vector.broadcast %cst_74 : f32 to vector<2x32xf32>
    %372 = arith.addf %371, %370 : vector<2x32xf32>
    %373 = arith.divf %371, %372 : vector<2x32xf32>
    %374 = vector.extract_strided_slice %23 {offsets = [6, 0], sizes = [2, 32], strides = [1, 1]} : vector<16x32xf32> to vector<2x32xf32>
    %375 = vector.extract_strided_slice %365 {offsets = [0, 32], sizes = [2, 32], strides = [1, 1]} : vector<2x96xf32> to vector<2x32xf32>
    %376 = arith.addf %374, %375 : vector<2x32xf32>
    %377 = arith.negf %376 : vector<2x32xf32>
    %378 = math.exp %377 : vector<2x32xf32>
    %cst_75 = arith.constant 1.000000e+00 : f32
    %379 = vector.broadcast %cst_75 : f32 to vector<2x32xf32>
    %380 = arith.addf %379, %378 : vector<2x32xf32>
    %381 = arith.divf %379, %380 : vector<2x32xf32>
    %382 = vector.extract_strided_slice %24 {offsets = [6, 0], sizes = [2, 32], strides = [1, 1]} : vector<16x32xf32> to vector<2x32xf32>
    %383 = vector.extract_strided_slice %365 {offsets = [0, 64], sizes = [2, 32], strides = [1, 1]} : vector<2x96xf32> to vector<2x32xf32>
    %384 = arith.mulf %373, %383 : vector<2x32xf32>
    %385 = arith.addf %382, %384 : vector<2x32xf32>
    %386 = math.tanh %385 : vector<2x32xf32>
    %cst_76 = arith.constant 1.000000e+00 : f32
    %387 = vector.broadcast %cst_76 : f32 to vector<2x32xf32>
    %388 = arith.subf %387, %381 : vector<2x32xf32>
    %389 = arith.mulf %388, %386 : vector<2x32xf32>
    %390 = arith.mulf %381, %321 : vector<2x32xf32>
    %391 = arith.addf %389, %390 : vector<2x32xf32>
    %392 = vector.extract_strided_slice %27 {offsets = [0, 3], sizes = [2, 1], strides = [1, 1]} : vector<2x8xi1> to vector<2x1xi1>
    %393 = vector.shape_cast %392 : vector<2x1xi1> to vector<2x1xi1>
    %394 = vector.broadcast %393 : vector<2x1xi1> to vector<2x32xi1>
    %395 = arith.select %394, %391, %321 : vector<2x32xi1>, vector<2x32xf32>
    %cst_77 = arith.constant 0.000000e+00 : f32
    %396 = vector.shape_cast %392 : vector<2x1xi1> to vector<2x1xi1>
    %397 = vector.broadcast %396 : vector<2x1xi1> to vector<2x32xi1>
    %398 = vector.broadcast %cst_77 : f32 to vector<2x32xf32>
    %399 = arith.select %397, %395, %398 : vector<2x32xi1>, vector<2x32xf32>
    %cst_78 = arith.constant dense<0.000000e+00> : vector<2x96xf32>
    %400 = tpu.matmul %358, %3, %cst_78 {dimension_numbers = #tpu.dot_dimension_numbers<[1], [0], [0], [1], [0, 0, 1, 1], [], []>} : vector<2x32xf32>, vector<32x96xf32>, vector<2x96xf32> -> vector<2x96xf32>
    %401 = vector.broadcast %5 : vector<1x96xf32> to vector<2x96xf32>
    %402 = arith.addf %400, %401 : vector<2x96xf32>
    %403 = vector.extract_strided_slice %19 {offsets = [10, 0], sizes = [2, 32], strides = [1, 1]} : vector<16x32xf32> to vector<2x32xf32>
    %404 = vector.extract_strided_slice %402 {offsets = [0, 0], sizes = [2, 32], strides = [1, 1]} : vector<2x96xf32> to vector<2x32xf32>
    %405 = arith.addf %403, %404 : vector<2x32xf32>
    %406 = arith.negf %405 : vector<2x32xf32>
    %407 = math.exp %406 : vector<2x32xf32>
    %cst_79 = arith.constant 1.000000e+00 : f32
    %408 = vector.broadcast %cst_79 : f32 to vector<2x32xf32>
    %409 = arith.addf %408, %407 : vector<2x32xf32>
    %410 = arith.divf %408, %409 : vector<2x32xf32>
    %411 = vector.extract_strided_slice %20 {offsets = [10, 0], sizes = [2, 32], strides = [1, 1]} : vector<16x32xf32> to vector<2x32xf32>
    %412 = vector.extract_strided_slice %402 {offsets = [0, 32], sizes = [2, 32], strides = [1, 1]} : vector<2x96xf32> to vector<2x32xf32>
    %413 = arith.addf %411, %412 : vector<2x32xf32>
    %414 = arith.negf %413 : vector<2x32xf32>
    %415 = math.exp %414 : vector<2x32xf32>
    %cst_80 = arith.constant 1.000000e+00 : f32
    %416 = vector.broadcast %cst_80 : f32 to vector<2x32xf32>
    %417 = arith.addf %416, %415 : vector<2x32xf32>
    %418 = arith.divf %416, %417 : vector<2x32xf32>
    %419 = vector.extract_strided_slice %21 {offsets = [10, 0], sizes = [2, 32], strides = [1, 1]} : vector<16x32xf32> to vector<2x32xf32>
    %420 = vector.extract_strided_slice %402 {offsets = [0, 64], sizes = [2, 32], strides = [1, 1]} : vector<2x96xf32> to vector<2x32xf32>
    %421 = arith.mulf %410, %420 : vector<2x32xf32>
    %422 = arith.addf %419, %421 : vector<2x32xf32>
    %423 = math.tanh %422 : vector<2x32xf32>
    %cst_81 = arith.constant 1.000000e+00 : f32
    %424 = vector.broadcast %cst_81 : f32 to vector<2x32xf32>
    %425 = arith.subf %424, %418 : vector<2x32xf32>
    %426 = arith.mulf %425, %423 : vector<2x32xf32>
    %427 = arith.mulf %418, %358 : vector<2x32xf32>
    %428 = arith.addf %426, %427 : vector<2x32xf32>
    %429 = vector.extract_strided_slice %27 {offsets = [0, 5], sizes = [2, 1], strides = [1, 1]} : vector<2x8xi1> to vector<2x1xi1>
    %430 = vector.shape_cast %429 : vector<2x1xi1> to vector<2x1xi1>
    %431 = vector.broadcast %430 : vector<2x1xi1> to vector<2x32xi1>
    %432 = arith.select %431, %428, %358 : vector<2x32xi1>, vector<2x32xf32>
    %cst_82 = arith.constant 0.000000e+00 : f32
    %433 = vector.shape_cast %429 : vector<2x1xi1> to vector<2x1xi1>
    %434 = vector.broadcast %433 : vector<2x1xi1> to vector<2x32xi1>
    %435 = vector.broadcast %cst_82 : f32 to vector<2x32xf32>
    %436 = arith.select %434, %432, %435 : vector<2x32xi1>, vector<2x32xf32>
    %cst_83 = arith.constant dense<0.000000e+00> : vector<2x96xf32>
    %437 = tpu.matmul %395, %7, %cst_83 {dimension_numbers = #tpu.dot_dimension_numbers<[1], [0], [0], [1], [0, 0, 1, 1], [], []>} : vector<2x32xf32>, vector<32x96xf32>, vector<2x96xf32> -> vector<2x96xf32>
    %438 = vector.broadcast %9 : vector<1x96xf32> to vector<2x96xf32>
    %439 = arith.addf %437, %438 : vector<2x96xf32>
    %440 = vector.extract_strided_slice %22 {offsets = [4, 0], sizes = [2, 32], strides = [1, 1]} : vector<16x32xf32> to vector<2x32xf32>
    %441 = vector.extract_strided_slice %439 {offsets = [0, 0], sizes = [2, 32], strides = [1, 1]} : vector<2x96xf32> to vector<2x32xf32>
    %442 = arith.addf %440, %441 : vector<2x32xf32>
    %443 = arith.negf %442 : vector<2x32xf32>
    %444 = math.exp %443 : vector<2x32xf32>
    %cst_84 = arith.constant 1.000000e+00 : f32
    %445 = vector.broadcast %cst_84 : f32 to vector<2x32xf32>
    %446 = arith.addf %445, %444 : vector<2x32xf32>
    %447 = arith.divf %445, %446 : vector<2x32xf32>
    %448 = vector.extract_strided_slice %23 {offsets = [4, 0], sizes = [2, 32], strides = [1, 1]} : vector<16x32xf32> to vector<2x32xf32>
    %449 = vector.extract_strided_slice %439 {offsets = [0, 32], sizes = [2, 32], strides = [1, 1]} : vector<2x96xf32> to vector<2x32xf32>
    %450 = arith.addf %448, %449 : vector<2x32xf32>
    %451 = arith.negf %450 : vector<2x32xf32>
    %452 = math.exp %451 : vector<2x32xf32>
    %cst_85 = arith.constant 1.000000e+00 : f32
    %453 = vector.broadcast %cst_85 : f32 to vector<2x32xf32>
    %454 = arith.addf %453, %452 : vector<2x32xf32>
    %455 = arith.divf %453, %454 : vector<2x32xf32>
    %456 = vector.extract_strided_slice %24 {offsets = [4, 0], sizes = [2, 32], strides = [1, 1]} : vector<16x32xf32> to vector<2x32xf32>
    %457 = vector.extract_strided_slice %439 {offsets = [0, 64], sizes = [2, 32], strides = [1, 1]} : vector<2x96xf32> to vector<2x32xf32>
    %458 = arith.mulf %447, %457 : vector<2x32xf32>
    %459 = arith.addf %456, %458 : vector<2x32xf32>
    %460 = math.tanh %459 : vector<2x32xf32>
    %cst_86 = arith.constant 1.000000e+00 : f32
    %461 = vector.broadcast %cst_86 : f32 to vector<2x32xf32>
    %462 = arith.subf %461, %455 : vector<2x32xf32>
    %463 = arith.mulf %462, %460 : vector<2x32xf32>
    %464 = arith.mulf %455, %395 : vector<2x32xf32>
    %465 = arith.addf %463, %464 : vector<2x32xf32>
    %466 = vector.extract_strided_slice %27 {offsets = [0, 2], sizes = [2, 1], strides = [1, 1]} : vector<2x8xi1> to vector<2x1xi1>
    %467 = vector.shape_cast %466 : vector<2x1xi1> to vector<2x1xi1>
    %468 = vector.broadcast %467 : vector<2x1xi1> to vector<2x32xi1>
    %469 = arith.select %468, %465, %395 : vector<2x32xi1>, vector<2x32xf32>
    %cst_87 = arith.constant 0.000000e+00 : f32
    %470 = vector.shape_cast %466 : vector<2x1xi1> to vector<2x1xi1>
    %471 = vector.broadcast %470 : vector<2x1xi1> to vector<2x32xi1>
    %472 = vector.broadcast %cst_87 : f32 to vector<2x32xf32>
    %473 = arith.select %471, %469, %472 : vector<2x32xi1>, vector<2x32xf32>
    %cst_88 = arith.constant dense<0.000000e+00> : vector<2x96xf32>
    %474 = tpu.matmul %432, %3, %cst_88 {dimension_numbers = #tpu.dot_dimension_numbers<[1], [0], [0], [1], [0, 0, 1, 1], [], []>} : vector<2x32xf32>, vector<32x96xf32>, vector<2x96xf32> -> vector<2x96xf32>
    %475 = vector.broadcast %5 : vector<1x96xf32> to vector<2x96xf32>
    %476 = arith.addf %474, %475 : vector<2x96xf32>
    %477 = vector.extract_strided_slice %19 {offsets = [12, 0], sizes = [2, 32], strides = [1, 1]} : vector<16x32xf32> to vector<2x32xf32>
    %478 = vector.extract_strided_slice %476 {offsets = [0, 0], sizes = [2, 32], strides = [1, 1]} : vector<2x96xf32> to vector<2x32xf32>
    %479 = arith.addf %477, %478 : vector<2x32xf32>
    %480 = arith.negf %479 : vector<2x32xf32>
    %481 = math.exp %480 : vector<2x32xf32>
    %cst_89 = arith.constant 1.000000e+00 : f32
    %482 = vector.broadcast %cst_89 : f32 to vector<2x32xf32>
    %483 = arith.addf %482, %481 : vector<2x32xf32>
    %484 = arith.divf %482, %483 : vector<2x32xf32>
    %485 = vector.extract_strided_slice %20 {offsets = [12, 0], sizes = [2, 32], strides = [1, 1]} : vector<16x32xf32> to vector<2x32xf32>
    %486 = vector.extract_strided_slice %476 {offsets = [0, 32], sizes = [2, 32], strides = [1, 1]} : vector<2x96xf32> to vector<2x32xf32>
    %487 = arith.addf %485, %486 : vector<2x32xf32>
    %488 = arith.negf %487 : vector<2x32xf32>
    %489 = math.exp %488 : vector<2x32xf32>
    %cst_90 = arith.constant 1.000000e+00 : f32
    %490 = vector.broadcast %cst_90 : f32 to vector<2x32xf32>
    %491 = arith.addf %490, %489 : vector<2x32xf32>
    %492 = arith.divf %490, %491 : vector<2x32xf32>
    %493 = vector.extract_strided_slice %21 {offsets = [12, 0], sizes = [2, 32], strides = [1, 1]} : vector<16x32xf32> to vector<2x32xf32>
    %494 = vector.extract_strided_slice %476 {offsets = [0, 64], sizes = [2, 32], strides = [1, 1]} : vector<2x96xf32> to vector<2x32xf32>
    %495 = arith.mulf %484, %494 : vector<2x32xf32>
    %496 = arith.addf %493, %495 : vector<2x32xf32>
    %497 = math.tanh %496 : vector<2x32xf32>
    %cst_91 = arith.constant 1.000000e+00 : f32
    %498 = vector.broadcast %cst_91 : f32 to vector<2x32xf32>
    %499 = arith.subf %498, %492 : vector<2x32xf32>
    %500 = arith.mulf %499, %497 : vector<2x32xf32>
    %501 = arith.mulf %492, %432 : vector<2x32xf32>
    %502 = arith.addf %500, %501 : vector<2x32xf32>
    %503 = vector.extract_strided_slice %27 {offsets = [0, 6], sizes = [2, 1], strides = [1, 1]} : vector<2x8xi1> to vector<2x1xi1>
    %504 = vector.shape_cast %503 : vector<2x1xi1> to vector<2x1xi1>
    %505 = vector.broadcast %504 : vector<2x1xi1> to vector<2x32xi1>
    %506 = arith.select %505, %502, %432 : vector<2x32xi1>, vector<2x32xf32>
    %cst_92 = arith.constant 0.000000e+00 : f32
    %507 = vector.shape_cast %503 : vector<2x1xi1> to vector<2x1xi1>
    %508 = vector.broadcast %507 : vector<2x1xi1> to vector<2x32xi1>
    %509 = vector.broadcast %cst_92 : f32 to vector<2x32xf32>
    %510 = arith.select %508, %506, %509 : vector<2x32xi1>, vector<2x32xf32>
    %cst_93 = arith.constant dense<0.000000e+00> : vector<2x96xf32>
    %511 = tpu.matmul %469, %7, %cst_93 {dimension_numbers = #tpu.dot_dimension_numbers<[1], [0], [0], [1], [0, 0, 1, 1], [], []>} : vector<2x32xf32>, vector<32x96xf32>, vector<2x96xf32> -> vector<2x96xf32>
    %512 = vector.broadcast %9 : vector<1x96xf32> to vector<2x96xf32>
    %513 = arith.addf %511, %512 : vector<2x96xf32>
    %514 = vector.extract_strided_slice %22 {offsets = [2, 0], sizes = [2, 32], strides = [1, 1]} : vector<16x32xf32> to vector<2x32xf32>
    %515 = vector.extract_strided_slice %513 {offsets = [0, 0], sizes = [2, 32], strides = [1, 1]} : vector<2x96xf32> to vector<2x32xf32>
    %516 = arith.addf %514, %515 : vector<2x32xf32>
    %517 = arith.negf %516 : vector<2x32xf32>
    %518 = math.exp %517 : vector<2x32xf32>
    %cst_94 = arith.constant 1.000000e+00 : f32
    %519 = vector.broadcast %cst_94 : f32 to vector<2x32xf32>
    %520 = arith.addf %519, %518 : vector<2x32xf32>
    %521 = arith.divf %519, %520 : vector<2x32xf32>
    %522 = vector.extract_strided_slice %23 {offsets = [2, 0], sizes = [2, 32], strides = [1, 1]} : vector<16x32xf32> to vector<2x32xf32>
    %523 = vector.extract_strided_slice %513 {offsets = [0, 32], sizes = [2, 32], strides = [1, 1]} : vector<2x96xf32> to vector<2x32xf32>
    %524 = arith.addf %522, %523 : vector<2x32xf32>
    %525 = arith.negf %524 : vector<2x32xf32>
    %526 = math.exp %525 : vector<2x32xf32>
    %cst_95 = arith.constant 1.000000e+00 : f32
    %527 = vector.broadcast %cst_95 : f32 to vector<2x32xf32>
    %528 = arith.addf %527, %526 : vector<2x32xf32>
    %529 = arith.divf %527, %528 : vector<2x32xf32>
    %530 = vector.extract_strided_slice %24 {offsets = [2, 0], sizes = [2, 32], strides = [1, 1]} : vector<16x32xf32> to vector<2x32xf32>
    %531 = vector.extract_strided_slice %513 {offsets = [0, 64], sizes = [2, 32], strides = [1, 1]} : vector<2x96xf32> to vector<2x32xf32>
    %532 = arith.mulf %521, %531 : vector<2x32xf32>
    %533 = arith.addf %530, %532 : vector<2x32xf32>
    %534 = math.tanh %533 : vector<2x32xf32>
    %cst_96 = arith.constant 1.000000e+00 : f32
    %535 = vector.broadcast %cst_96 : f32 to vector<2x32xf32>
    %536 = arith.subf %535, %529 : vector<2x32xf32>
    %537 = arith.mulf %536, %534 : vector<2x32xf32>
    %538 = arith.mulf %529, %469 : vector<2x32xf32>
    %539 = arith.addf %537, %538 : vector<2x32xf32>
    %540 = vector.extract_strided_slice %27 {offsets = [0, 1], sizes = [2, 1], strides = [1, 1]} : vector<2x8xi1> to vector<2x1xi1>
    %541 = vector.shape_cast %540 : vector<2x1xi1> to vector<2x1xi1>
    %542 = vector.broadcast %541 : vector<2x1xi1> to vector<2x32xi1>
    %543 = arith.select %542, %539, %469 : vector<2x32xi1>, vector<2x32xf32>
    %cst_97 = arith.constant 0.000000e+00 : f32
    %544 = vector.shape_cast %540 : vector<2x1xi1> to vector<2x1xi1>
    %545 = vector.broadcast %544 : vector<2x1xi1> to vector<2x32xi1>
    %546 = vector.broadcast %cst_97 : f32 to vector<2x32xf32>
    %547 = arith.select %545, %543, %546 : vector<2x32xi1>, vector<2x32xf32>
    %cst_98 = arith.constant dense<0.000000e+00> : vector<2x96xf32>
    %548 = tpu.matmul %506, %3, %cst_98 {dimension_numbers = #tpu.dot_dimension_numbers<[1], [0], [0], [1], [0, 0, 1, 1], [], []>} : vector<2x32xf32>, vector<32x96xf32>, vector<2x96xf32> -> vector<2x96xf32>
    %549 = vector.broadcast %5 : vector<1x96xf32> to vector<2x96xf32>
    %550 = arith.addf %548, %549 : vector<2x96xf32>
    %551 = vector.extract_strided_slice %19 {offsets = [14, 0], sizes = [2, 32], strides = [1, 1]} : vector<16x32xf32> to vector<2x32xf32>
    %552 = vector.extract_strided_slice %550 {offsets = [0, 0], sizes = [2, 32], strides = [1, 1]} : vector<2x96xf32> to vector<2x32xf32>
    %553 = arith.addf %551, %552 : vector<2x32xf32>
    %554 = arith.negf %553 : vector<2x32xf32>
    %555 = math.exp %554 : vector<2x32xf32>
    %cst_99 = arith.constant 1.000000e+00 : f32
    %556 = vector.broadcast %cst_99 : f32 to vector<2x32xf32>
    %557 = arith.addf %556, %555 : vector<2x32xf32>
    %558 = arith.divf %556, %557 : vector<2x32xf32>
    %559 = vector.extract_strided_slice %20 {offsets = [14, 0], sizes = [2, 32], strides = [1, 1]} : vector<16x32xf32> to vector<2x32xf32>
    %560 = vector.extract_strided_slice %550 {offsets = [0, 32], sizes = [2, 32], strides = [1, 1]} : vector<2x96xf32> to vector<2x32xf32>
    %561 = arith.addf %559, %560 : vector<2x32xf32>
    %562 = arith.negf %561 : vector<2x32xf32>
    %563 = math.exp %562 : vector<2x32xf32>
    %cst_100 = arith.constant 1.000000e+00 : f32
    %564 = vector.broadcast %cst_100 : f32 to vector<2x32xf32>
    %565 = arith.addf %564, %563 : vector<2x32xf32>
    %566 = arith.divf %564, %565 : vector<2x32xf32>
    %567 = vector.extract_strided_slice %21 {offsets = [14, 0], sizes = [2, 32], strides = [1, 1]} : vector<16x32xf32> to vector<2x32xf32>
    %568 = vector.extract_strided_slice %550 {offsets = [0, 64], sizes = [2, 32], strides = [1, 1]} : vector<2x96xf32> to vector<2x32xf32>
    %569 = arith.mulf %558, %568 : vector<2x32xf32>
    %570 = arith.addf %567, %569 : vector<2x32xf32>
    %571 = math.tanh %570 : vector<2x32xf32>
    %cst_101 = arith.constant 1.000000e+00 : f32
    %572 = vector.broadcast %cst_101 : f32 to vector<2x32xf32>
    %573 = arith.subf %572, %566 : vector<2x32xf32>
    %574 = arith.mulf %573, %571 : vector<2x32xf32>
    %575 = arith.mulf %566, %506 : vector<2x32xf32>
    %576 = arith.addf %574, %575 : vector<2x32xf32>
    %577 = vector.extract_strided_slice %27 {offsets = [0, 7], sizes = [2, 1], strides = [1, 1]} : vector<2x8xi1> to vector<2x1xi1>
    %578 = vector.shape_cast %577 : vector<2x1xi1> to vector<2x1xi1>
    %579 = vector.broadcast %578 : vector<2x1xi1> to vector<2x32xi1>
    %580 = arith.select %579, %576, %506 : vector<2x32xi1>, vector<2x32xf32>
    %cst_102 = arith.constant 0.000000e+00 : f32
    %581 = vector.shape_cast %577 : vector<2x1xi1> to vector<2x1xi1>
    %582 = vector.broadcast %581 : vector<2x1xi1> to vector<2x32xi1>
    %583 = vector.broadcast %cst_102 : f32 to vector<2x32xf32>
    %584 = arith.select %582, %580, %583 : vector<2x32xi1>, vector<2x32xf32>
    %cst_103 = arith.constant dense<0.000000e+00> : vector<2x96xf32>
    %585 = tpu.matmul %543, %7, %cst_103 {dimension_numbers = #tpu.dot_dimension_numbers<[1], [0], [0], [1], [0, 0, 1, 1], [], []>} : vector<2x32xf32>, vector<32x96xf32>, vector<2x96xf32> -> vector<2x96xf32>
    %586 = vector.broadcast %9 : vector<1x96xf32> to vector<2x96xf32>
    %587 = arith.addf %585, %586 : vector<2x96xf32>
    %588 = vector.extract_strided_slice %22 {offsets = [0, 0], sizes = [2, 32], strides = [1, 1]} : vector<16x32xf32> to vector<2x32xf32>
    %589 = vector.extract_strided_slice %587 {offsets = [0, 0], sizes = [2, 32], strides = [1, 1]} : vector<2x96xf32> to vector<2x32xf32>
    %590 = arith.addf %588, %589 : vector<2x32xf32>
    %591 = arith.negf %590 : vector<2x32xf32>
    %592 = math.exp %591 : vector<2x32xf32>
    %cst_104 = arith.constant 1.000000e+00 : f32
    %593 = vector.broadcast %cst_104 : f32 to vector<2x32xf32>
    %594 = arith.addf %593, %592 : vector<2x32xf32>
    %595 = arith.divf %593, %594 : vector<2x32xf32>
    %596 = vector.extract_strided_slice %23 {offsets = [0, 0], sizes = [2, 32], strides = [1, 1]} : vector<16x32xf32> to vector<2x32xf32>
    %597 = vector.extract_strided_slice %587 {offsets = [0, 32], sizes = [2, 32], strides = [1, 1]} : vector<2x96xf32> to vector<2x32xf32>
    %598 = arith.addf %596, %597 : vector<2x32xf32>
    %599 = arith.negf %598 : vector<2x32xf32>
    %600 = math.exp %599 : vector<2x32xf32>
    %cst_105 = arith.constant 1.000000e+00 : f32
    %601 = vector.broadcast %cst_105 : f32 to vector<2x32xf32>
    %602 = arith.addf %601, %600 : vector<2x32xf32>
    %603 = arith.divf %601, %602 : vector<2x32xf32>
    %604 = vector.extract_strided_slice %24 {offsets = [0, 0], sizes = [2, 32], strides = [1, 1]} : vector<16x32xf32> to vector<2x32xf32>
    %605 = vector.extract_strided_slice %587 {offsets = [0, 64], sizes = [2, 32], strides = [1, 1]} : vector<2x96xf32> to vector<2x32xf32>
    %606 = arith.mulf %595, %605 : vector<2x32xf32>
    %607 = arith.addf %604, %606 : vector<2x32xf32>
    %608 = math.tanh %607 : vector<2x32xf32>
    %cst_106 = arith.constant 1.000000e+00 : f32
    %609 = vector.broadcast %cst_106 : f32 to vector<2x32xf32>
    %610 = arith.subf %609, %603 : vector<2x32xf32>
    %611 = arith.mulf %610, %608 : vector<2x32xf32>
    %612 = arith.mulf %603, %543 : vector<2x32xf32>
    %613 = arith.addf %611, %612 : vector<2x32xf32>
    %614 = vector.extract_strided_slice %27 {offsets = [0, 0], sizes = [2, 1], strides = [1, 1]} : vector<2x8xi1> to vector<2x1xi1>
    %615 = vector.shape_cast %614 : vector<2x1xi1> to vector<2x1xi1>
    %616 = vector.broadcast %615 : vector<2x1xi1> to vector<2x32xi1>
    %617 = arith.select %616, %613, %543 : vector<2x32xi1>, vector<2x32xf32>
    %cst_107 = arith.constant 0.000000e+00 : f32
    %618 = vector.shape_cast %614 : vector<2x1xi1> to vector<2x1xi1>
    %619 = vector.broadcast %618 : vector<2x1xi1> to vector<2x32xi1>
    %620 = vector.broadcast %cst_107 : f32 to vector<2x32xf32>
    %621 = arith.select %619, %617, %620 : vector<2x32xi1>, vector<2x32xf32>
    %622 = tpu.concatenate %66, %140, %214, %288, %362, %436, %510, %584 in 0 : vector<2x32xf32>, vector<2x32xf32>, vector<2x32xf32>, vector<2x32xf32>, vector<2x32xf32>, vector<2x32xf32>, vector<2x32xf32>, vector<2x32xf32> -> vector<16x32xf32>
    %623 = tpu.concatenate %621, %547, %473, %399, %325, %251, %177, %103 in 0 : vector<2x32xf32>, vector<2x32xf32>, vector<2x32xf32>, vector<2x32xf32>, vector<2x32xf32>, vector<2x32xf32>, vector<2x32xf32>, vector<2x32xf32> -> vector<16x32xf32>
    %cst_108 = arith.constant dense<0.000000e+00> : vector<16x32xf32>
    %624 = tpu.matmul %622, %10, %cst_108 {dimension_numbers = #tpu.dot_dimension_numbers<[1], [0], [0], [1], [0, 0, 1, 1], [], []>} : vector<16x32xf32>, vector<32x32xf32>, vector<16x32xf32> -> vector<16x32xf32>
    %cst_109 = arith.constant dense<0.000000e+00> : vector<16x32xf32>
    %625 = tpu.matmul %623, %11, %cst_109 {dimension_numbers = #tpu.dot_dimension_numbers<[1], [0], [0], [1], [0, 0, 1, 1], [], []>} : vector<16x32xf32>, vector<32x32xf32>, vector<16x32xf32> -> vector<16x32xf32>
    %626 = arith.addf %624, %625 : vector<16x32xf32>
    %627 = vector.broadcast %12 : vector<1x32xf32> to vector<16x32xf32>
    %628 = arith.addf %626, %627 : vector<16x32xf32>
    %c0_110 = arith.constant 0 : index
    %c0_111 = arith.constant 0 : index
    %629 = vector.load %arg13[%c0_110, %c0_111] : memref<16x32xf32, #tpu.memory_space<vmem>>, vector<16x32xf32>
    tpu.vector_store %arg13[%c0_110, %c0_111], %628 {strides = array<i32>} : memref<16x32xf32, #tpu.memory_space<vmem>>, vector<16x32xf32>,
    %cst_112 = arith.constant dense<0.000000e+00> : vector<2x32xf32>
    %630 = tpu.matmul %580, %10, %cst_112 {dimension_numbers = #tpu.dot_dimension_numbers<[1], [0], [0], [1], [0, 0, 1, 1], [], []>} : vector<2x32xf32>, vector<32x32xf32>, vector<2x32xf32> -> vector<2x32xf32>
    %cst_113 = arith.constant dense<0.000000e+00> : vector<2x32xf32>
    %631 = tpu.matmul %617, %11, %cst_113 {dimension_numbers = #tpu.dot_dimension_numbers<[1], [0], [0], [1], [0, 0, 1, 1], [], []>} : vector<2x32xf32>, vector<32x32xf32>, vector<2x32xf32> -> vector<2x32xf32>
    %632 = arith.addf %630, %631 : vector<2x32xf32>
    %633 = vector.broadcast %12 : vector<1x32xf32> to vector<2x32xf32>
    %634 = arith.addf %632, %633 : vector<2x32xf32>
    %c0_114 = arith.constant 0 : index
    %c0_115 = arith.constant 0 : index
    %635 = vector.load %arg14[%c0_114, %c0_115] : memref<2x32xf32, #tpu.memory_space<vmem>>, vector<2x32xf32>
    tpu.vector_store %arg14[%c0_114, %c0_115], %634 {strides = array<i32>} : memref<2x32xf32, #tpu.memory_space<vmem>>, vector<2x32xf32>,
    return
  }
}

</mosaic_0001>

<bundles_post_ra>
// kernel: tpu_custom_call.1
= control target key start
LH: loop header
LB: loop body
LE: loop exit
PB: predicated region body
PF: predicated region fallthrough
CT: control target
= control target key end

     0   :  { %20 = vsyncpa [#allocation3], 0  ;;  %s4222_s0 = inlined_call_operand.hbm [shape: f32[16,32], index: 0, kind: input, shape index: {}]   ;;  %s4223_s1 = inlined_call_operand.vmem [shape: s32[2,1], index: 1, kind: input, shape index: {}]   ;;  %s4224_s2 = inlined_call_operand.hbm [shape: f32[32,96], index: 2, kind: input, shape index: {}]   ;;  %s4225_s3 = inlined_call_operand.hbm [shape: f32[32,96], index: 3, kind: input, shape index: {}]   ;;  %s4226_s4 = inlined_call_operand.vmem [shape: f32[1,96], index: 4, kind: input, shape index: {}]   ;;  %s4227_s5 = inlined_call_operand.vmem [shape: f32[1,96], index: 5, kind: input, shape index: {}]   ;;  %s4228_s6 = inlined_call_operand.hbm [shape: f32[32,96], index: 6, kind: input, shape index: {}]   ;;  %s4229_s7 = inlined_call_operand.hbm [shape: f32[32,96], index: 7, kind: input, shape index: {}]   ;;  %s4230_s8 = inlined_call_operand.vmem [shape: f32[1,96], index: 8, kind: input, shape index: {}]   ;;  %s4231_s9 = inlined_call_operand.vmem [shape: f32[1,96], index: 9, kind: input, shape index: {}]   ;;  %s4232_s10 = inlined_call_operand.vmem [shape: f32[32,32], index: 10, kind: input, shape index: {}]   ;;  %s4233_s11 = inlined_call_operand.hbm [shape: f32[32,32], index: 11, kind: input, shape index: {}]   ;;  %s4234_s12 = inlined_call_operand.vmem [shape: f32[1,32], index: 12, kind: input, shape index: {}]   ;;  %s4235_s13 = inlined_call_operand.hbm [shape: f32[16,32], index: 13, kind: output, shape index: {0}]   ;;  %s4236_s14 = inlined_call_operand.hbm [shape: f32[2,32], index: 14, kind: output, shape index: {1}]  }
   0x1   :  { %21 = vsyncpa [#allocation6], 0 }
   0x2   :  { %22 = vsyncpa [#allocation9], 0 }
   0x3   :  { %23 = vsyncpa [#allocation12], 0 }
   0x4   :  { %24 = vsyncpa [#allocation4], 0 }
   0x5   :  { %25 = vsyncpa [#allocation15], 0  ;;  %s3435_s29 = smov [#allocation5]   ;;  %s3436_s15 = smov [#allocation8]  }
   0x6   :  { %s45_s30 = sshll.u32 %s3435_s29, 4  ;;  %s73_s16 = sshll.u32 %s3436_s15, 4  ;;  %s46_s30 = int_to_ptr.vmem [resolvable:$true] %s45_s30  ;;  %s3534_s16 = int_to_ptr.vmem [resolvable:$true] %s73_s16 }
   0x7   :  { %s3247_s19 = scalar_lea.hbm %s4224_s2, 512 }
   0x8   :  { %p3248_p0 = scmp.ne.s32.totalorder %s4224_s2, %s3247_s19  ;;  %p3251_p1 = scmp.lt.u32.totalorder %s3247_s19, %s4224_s2 }
   0xa   :  { %p3253_p2 = pnand %p3251_p1, %p3248_p0 }
   0xc   :  { %3256 = shalt.err (!%p3253_p2)
}
   0xd   :  { %s3257_s24 = scalar_lea.vmem %s46_s30, 512  ;;  %p3262_p4 = scmp.lt.s32.totalorder %s46_s30, %s46_s30 }
   0xe   :  { %p3258_p3 = scmp.ne.s32.totalorder %s46_s30, %s3257_s24  ;;  %p3263_p5 = scmp.lt.s32.totalorder %s3257_s24, %s3257_s24 }
  0x10   :  { %p3264_p6 = por %p3263_p5, %p3262_p4 }
  0x12   :  { %p3265_p7 = pnand %p3264_p6, %p3258_p3 }
  0x14   :  { %3268 = shalt.err (!%p3265_p7)
}
  0x15   :  { %s3437_s25 = smov 128   ;;  %s3438_s26 = smov 8  }
  0x16   :  { %51 = dma.hbm_to_vmem [thread:$0]  %s4224_s2, 512, %s46_s30, [#allocation6], %s3437_s25, %s3437_s25, %s3438_s26  }
  0x17   :  { %s3269_s17 = scalar_lea.hbm %s4228_s6, 512 }
  0x18   :  { %p3270_p8 = scmp.ne.s32.totalorder %s4228_s6, %s3269_s17  ;;  %p3273_p9 = scmp.lt.u32.totalorder %s3269_s17, %s4228_s6 }
  0x1a   :  { %p3275_p10 = pnand %p3273_p9, %p3270_p8 }
  0x1c   :  { %3278 = shalt.err (!%p3275_p10)
}
  0x1d   :  { %s3279_s22 = scalar_lea.vmem %s3534_s16, 512  ;;  %p3284_p12 = scmp.lt.s32.totalorder %s3534_s16, %s3534_s16 }
  0x1e   :  { %p3280_p11 = scmp.ne.s32.totalorder %s3534_s16, %s3279_s22  ;;  %p3285_p13 = scmp.lt.s32.totalorder %s3279_s22, %s3279_s22 }
  0x20   :  { %p3286_p0 = por %p3285_p13, %p3284_p12 }
  0x22   :  { %p3287_p1 = pnand %p3286_p0, %p3280_p11 }
  0x24   :  { %3290 = shalt.err (!%p3287_p1)
}
  0x25   :  { %79 = dma.hbm_to_vmem [thread:$0]  %s4228_s6, 512, %s3534_s16, [#allocation9], %s3437_s25, %s3437_s25, %s3438_s26  }
  0x26   :  { %s3439_s23 = smov [#allocation2]   ;;  %s3440_s27 = smov [#allocation7]  }
  0x27   :  { %s31_s24 = sshll.u32 %s3439_s23, 4  ;;  %s57_s28 = sshll.u32 %s3440_s27, 4  ;;  %s32_s24 = int_to_ptr.vmem [resolvable:$true] %s31_s24  ;;  %s3571_s28 = int_to_ptr.vmem [resolvable:$true] %s57_s28 }
  0x28   :  { %s3291_s17 = scalar_lea.hbm %s4222_s0, 256 }
  0x29   :  { %p3292_p2 = scmp.ne.s32.totalorder %s4222_s0, %s3291_s17  ;;  %p3295_p3 = scmp.lt.u32.totalorder %s3291_s17, %s4222_s0 }
  0x2b   :  { %p3297_p4 = pnand %p3295_p3, %p3292_p2 }
  0x2d   :  { %3300 = shalt.err (!%p3297_p4)
}
  0x2e   :  { %s3301_s6 = scalar_lea.vmem %s32_s24, 256  ;;  %p3306_p6 = scmp.lt.s32.totalorder %s32_s24, %s32_s24 }
  0x2f   :  { %p3302_p5 = scmp.ne.s32.totalorder %s32_s24, %s3301_s6  ;;  %p3307_p7 = scmp.lt.s32.totalorder %s3301_s6, %s3301_s6 }
  0x31   :  { %p3308_p8 = por %p3307_p7, %p3306_p6 }
  0x33   :  { %p3309_p9 = pnand %p3308_p8, %p3302_p5 }
  0x35   :  { %3312 = shalt.err (!%p3309_p9)
}
  0x36   :  { %37 = dma.hbm_to_vmem [thread:$0]  %s4222_s0, 256, %s32_s24, [#allocation3], %s3437_s25, %s3437_s25, %s3438_s26  }
  0x37   :  { %s3313_s23 = scalar_lea.hbm %s4225_s3, 512 }
  0x38   :  { %p3314_p10 = scmp.ne.s32.totalorder %s4225_s3, %s3313_s23  ;;  %p3317_p11 = scmp.lt.u32.totalorder %s3313_s23, %s4225_s3 }
  0x3a   :  { %p3319_p12 = pnand %p3317_p11, %p3314_p10 }
  0x3c   :  { %3322 = shalt.err (!%p3319_p12)
}
  0x3d   :  { %s3323_s18 = scalar_lea.vmem %s3571_s28, 512  ;;  %p3328_p0 = scmp.lt.s32.totalorder %s3571_s28, %s3571_s28 }
  0x3e   :  { %p3324_p13 = scmp.ne.s32.totalorder %s3571_s28, %s3323_s18  ;;  %p3329_p1 = scmp.lt.s32.totalorder %s3323_s18, %s3323_s18 }
  0x40   :  { %p3330_p2 = por %p3329_p1, %p3328_p0 }
  0x42   :  { %p3331_p3 = pnand %p3330_p2, %p3324_p13 }
  0x44   :  { %3334 = shalt.err (!%p3331_p3)
}
  0x45   :  { %63 = dma.hbm_to_vmem [thread:$0]  %s4225_s3, 512, %s3571_s28, [#allocation6], %s3437_s25, %s3437_s25, %s3438_s26  }
  0x46   :  { %s3441_s19 = smov [#allocation10]   ;;  %s3442_s21 = smov [#allocation11]  }
  0x47   :  { %s85_s20 = sshll.u32 %s3441_s19, 4  ;;  %s103_s6 = sshll.u32 %s3442_s21, 4  ;;  %s86_s20 = int_to_ptr.vmem [resolvable:$true] %s85_s20  ;;  %s3608_s6 = int_to_ptr.vmem [resolvable:$true] %s103_s6 }
  0x48   :  { %s3335_s2 = scalar_lea.hbm %s4229_s7, 512 }
  0x49   :  { %p3336_p4 = scmp.ne.s32.totalorder %s4229_s7, %s3335_s2  ;;  %p3339_p5 = scmp.lt.u32.totalorder %s3335_s2, %s4229_s7 }
  0x4b   :  { %p3341_p6 = pnand %p3339_p5, %p3336_p4 }
  0x4d   :  { %3344 = shalt.err (!%p3341_p6)
}
  0x4e   :  { %s3345_s3 = scalar_lea.vmem %s86_s20, 512  ;;  %p3350_p8 = scmp.lt.s32.totalorder %s86_s20, %s86_s20 }
  0x4f   :  { %p3346_p7 = scmp.ne.s32.totalorder %s86_s20, %s3345_s3  ;;  %p3351_p9 = scmp.lt.s32.totalorder %s3345_s3, %s3345_s3 }
  0x51   :  { %p3352_p10 = por %p3351_p9, %p3350_p8 }
  0x53   :  { %p3353_p11 = pnand %p3352_p10, %p3346_p7 }
  0x55   :  { %3356 = shalt.err (!%p3353_p11)
}
  0x56   :  { %91 = dma.hbm_to_vmem [thread:$0]  %s4229_s7, 512, %s86_s20, [#allocation9], %s3437_s25, %s3437_s25, %s3438_s26  }
  0x57   :  { %s3357_s0 = scalar_lea.hbm %s4233_s11, 512 }
  0x58   :  { %p3358_p12 = scmp.ne.s32.totalorder %s4233_s11, %s3357_s0  ;;  %p3361_p13 = scmp.lt.u32.totalorder %s3357_s0, %s4233_s11 }
  0x5a   :  { %p3363_p0 = pnand %p3361_p13, %p3358_p12 }
  0x5c   :  { %3366 = shalt.err (!%p3363_p0)
}
  0x5d   :  { %s3367_s22 = scalar_lea.vmem %s3608_s6, 512  ;;  %p3372_p2 = scmp.lt.s32.totalorder %s3608_s6, %s3608_s6 }
  0x5e   :  { %p3368_p1 = scmp.ne.s32.totalorder %s3608_s6, %s3367_s22  ;;  %p3373_p3 = scmp.lt.s32.totalorder %s3367_s22, %s3367_s22 }
  0x60   :  { %p3374_p4 = por %p3373_p3, %p3372_p2 }
  0x62   :  { %p3375_p5 = pnand %p3374_p4, %p3368_p1 }
  0x64   :  { %3378 = shalt.err (!%p3375_p5)
}
  0x65   :  { %109 = dma.hbm_to_vmem [thread:$0]  %s4233_s11, 512, %s3608_s6, [#allocation12], %s3437_s25, %s3437_s25, %s3438_s26  }
  0x66   :  { %3423 = dma.done.wait [#allocation3], 256  }
  0x67   :  { %3424 = vsyncadd [#allocation3], 4294967040 }
  0x68   :  { %3425 = dma.done.wait [#allocation6], 1024  }
  0x69   :  { %3426 = vsyncadd [#allocation6], 4294966272 }
  0x6a   :  { %3427 = dma.done.wait [#allocation9], 1024  }
  0x6b   :  { %3428 = vsyncadd [#allocation9], 4294966272 }
  0x6c   :  { %3429 = dma.done.wait [#allocation12], 512  }
  0x6d   :  { %3430 = vsyncadd [#allocation12], 4294966784  ;;  %vm168_vm0 = vcmask 261120   ;;  %v133_v0 = vld [vmem:[#allocation5] sm:$0xff]  ;;  %v134_v1 = vld [vmem:[#allocation5 + $0x8] sm:$0xff]  ;;  %v3443_v19 = vmov 0.0|0.0   ;;  %v331_v55 = vlaneseq }
  0x6e   :  { %v135_v2 = vld [vmem:[#allocation5 + $0x10] sm:$0xff]  ;;  %v2973_v3 = vpack.c.bf16 %v134_v1, %v133_v0  ;;  %v136_v4 = vld [vmem:[#allocation5 + $0x18] sm:$0xff]  ;;  %v143_v7 = vld [vmem:[#allocation8] sm:$0xff]  ;;  %vm3444_vm1 = vmmov 0   ;;  %v3445_v24 = vmov 0.0   ;;  %v3446_v28 = vmov 0  }
  0x6f   :  { %v130_v5 = vld [vmem:[#allocation2] sm:$0xff]  ;;  %v2977_v6 = vpack.c.bf16 %v136_v4, %v135_v2  ;;  %v144_v8 = vld [vmem:[#allocation8 + $0x8] sm:$0xff]  ;;  %v146_v11 = vld [vmem:[#allocation8 + $0x18] sm:$0xff]  ;;  %3139 = vset.pattern.permute.xlu0 %v3446_v28  ;;  %3140 = vset.pattern.permute.xlu1 %v3446_v28  ;;  %v332_v56 = vand.u32 127, %v331_v55  ;;  %s3452_s15 = smov 32   ;;  %vm2163_vm11 = vcmask 1041408  }
  0x70   :  { %2739 = vmatprep.mubr.msk.f32.mxu0 %vm168_vm0, %v130_v5  ;;  %2750 = vmatprep.mubr.msk.f32.mxu1 %vm168_vm0, %v130_v5  ;;  %v2981_v9 = vpack.c.bf16 %v144_v8, %v143_v7  ;;  %v145_v10 = vld [vmem:[#allocation8 + $0x10] sm:$0xff]  ;;  %v137_v12 = vld [vmem:[#allocation7] sm:$0xff]  ;;  %v138_v13 = vld [vmem:[#allocation7 + $0x8] sm:$0xff]  ;;  %v3448_v5 = vmov 7   ;;  %vm2165_vm12 = vcmask 1043456   ;;  %vm2167_vm13 = vcmask 1045504  }
  0x71   :  { %2974 = vmatprep.subr.bf16.mxu0 %v2973_v3  ;;  %v2985_v14 = vpack.c.bf16 %v146_v11, %v145_v10  ;;  %v131_v15 = vld [vmem:[#allocation2 + $0x8] sm:$0xff]  ;;  %v3647_v16 = vpack.c.bf16 %v138_v13, %v137_v12  ;;  %v147_v17 = vld [vmem:[#allocation10] sm:$0xff]  ;;  %v148_v18 = vld [vmem:[#allocation10 + $0x8] sm:$0xff]  ;;  %s3457_s6 = smov [#allocation14]   ;;  %vm2536_vm14 = vcmask 254976  }
  0x72   :  { %2976 = vmatpush3.bf16.msra.mxu0 %v2973_v3  ;;  %2982 = vmatprep.subr.bf16.mxu1 %v2981_v9  ;;  %v139_v20 = vld [vmem:[#allocation7 + $0x10] sm:$0xff]  ;;  %v140_v21 = vld [vmem:[#allocation7 + $0x18] sm:$0xff]  ;;  %v3651_v22 = vpack.c.bf16 %v148_v18, %v147_v17  ;;  %s2556_s2 = sshll.u32 %s3457_s6, 4  ;;  %s2557_s2 = int_to_ptr.vmem [resolvable:$true] %s2556_s2 }
  0x73   :  { %2978 = vmatprep.subr.bf16.mxu0 %v2977_v6  ;;  %2984 = vmatpush3.bf16.msra.mxu1 %v2981_v9  ;;  %v3654_v23 = vpack.c.bf16 %v140_v21, %v139_v20  ;;  %v149_v25 = vld [vmem:[#allocation10 + $0x10] sm:$0xff]  ;;  %v150_v26 = vld [vmem:[#allocation10 + $0x18] sm:$0xff]  ;;  %s3379_s30 = scalar_lea.vmem %s2557_s2, 32  ;;  %p3384_p7 = scmp.lt.s32.totalorder %s2557_s2, %s2557_s2 }
  0x74   :  { %2986 = vmatprep.subr.bf16.mxu1 %v2985_v14  ;;  %v3662_v27 = vpack.c.bf16 %v150_v26, %v149_v25  ;;  %v2572_v29 = vld [vmem:[%s4226_s4] ss:$0 sm:$0xff]  ;;  %s3447_s4 = smov 64   ;;  %p3380_p6 = scmp.ne.s32.totalorder %s2557_s2, %s3379_s30 }
  0x75   :  { %v2575_v33 = vld [vmem:[%s4230_s8] ss:$0 sm:$0xff]  ;;  %p3385_p8 = scmp.lt.s32.totalorder %s3379_s30, %s3379_s30 }
  0x76   :  { %2980 = vmatpush3.bf16.msra.mxu0 %v2977_v6  ;;  %v3698_v37 = vld [vmem:[%s4227_s5] ss:$0 sm:$0xff] }
  0x77   :  { %2989 = vmatprep.subr.bf16.mxu0 %v3443_v19  ;;  %2988 = vmatpush3.bf16.msra.mxu1 %v2985_v14  ;;  %v132_v42 = vld [vmem:[%s4223_s1] sm:$0x3]  ;;  %s3449_s1 = smov 96   ;;  %p3386_p9 = por %p3385_p8, %p3384_p7 }
  0x78   :  { %2995 = vmatprep.subr.bf16.mxu1 %v3443_v19  ;;  %v3711_v49 = vld [vmem:[%s4231_s9] ss:$0 sm:$0xff] }
  0x79   :  { %2740 = vmatmul.mubr.msk.f32.vlgmr.msra.gmra.mrb[0].mxu0 %vm168_vm0, %v131_v15  ;;  %p3387_p10 = pnand %p3386_p9, %p3380_p6 }
  0x7a   :  { %2991 = vmatpush3.bf16.msra.mxu0 %v3647_v16  ;;  %2761 = vmatprep.mubr.msk.f32.mxu0 %vm3444_vm1, %v3445_v24 }
  0x7b   :  { %2992 = vmatprep.subr.bf16.mxu0 %v3443_v19  ;;  %2751 = vmatmul.mubr.msk.f32.vlgmr.msra.gmra.mrb[0].mxu1 %vm168_vm0, %v131_v15 }
  0x7c   :  { %2997 = vmatpush3.bf16.msra.mxu1 %v3651_v22  ;;  %2772 = vmatprep.mubr.msk.f32.mxu1 %vm3444_vm1, %v3445_v24 }
  0x7d   :  { %2998 = vmatprep.subr.bf16.mxu1 %v3443_v19 }
  0x7e   :  { %2994 = vmatpush3.bf16.msra.mxu0 %v3654_v23 }
  0x7f   :  { %3001 = vmatprep.subr.bf16.mxu0 %v3443_v19 }
  0x80   :  { %3000 = vmatpush3.bf16.msra.mxu1 %v3662_v27 }
  0x81   :  { %2762 = vmatmul.mubr.f32.vlgmr.msra.gmra.mrb[2].mxu0 %v3445_v24  ;;  %3007 = vmatprep.subr.bf16.mxu1 %v3443_v19 }
  0x82   :  { %3003 = vmatpush3.bf16.msra.mxu0 %v3647_v16  ;;  %2783 = vmatprep.mubr.msk.f32.mxu0 %vm3444_vm1, %v3445_v24 }
  0x83   :  { %3004 = vmatprep.subr.bf16.mxu0 %v3443_v19  ;;  %2773 = vmatmul.mubr.f32.vlgmr.msra.gmra.mrb[2].mxu1 %v3445_v24 }
  0x84   :  { %3009 = vmatpush3.bf16.msra.mxu1 %v3651_v22  ;;  %2794 = vmatprep.mubr.msk.f32.mxu1 %vm3444_vm1, %v3445_v24 }
  0x85   :  { %3010 = vmatprep.subr.bf16.mxu1 %v3443_v19 }
  0x86   :  { %3006 = vmatpush3.bf16.msra.mxu0 %v3654_v23 }
  0x87   :  { %3013 = vmatprep.subr.bf16.mxu0 %v3443_v19 }
  0x88   :  { %3012 = vmatpush3.bf16.msra.mxu1 %v3662_v27 }
  0x89   :  { %3019 = vmatprep.subr.bf16.mxu1 %v3443_v19 }
 0x14c   :  { %v2741_v30 = vpop.f32.mrb[0].mxu0 }
 0x14d   :  { %v3688_v31 = vadd.f32 %v2741_v30, %v2572_v29  ;;  %v241_v32 = vpop.f32.mrb[1].mxu0 }
 0x14e   :  { %v2752_v34 = vpop.f32.mrb[0].mxu1  ;;  %v3705_v44 = vadd.f32 %v2572_v29, %v241_v32 }
 0x14f   :  { %v322_v35 = vpop.f32.mrb[1].mxu1  ;;  %v3719_v59 = vadd.f32 %v2752_v34, %v2575_v33 }
 0x150   :  { %v3693_v36 = vadd.f32 %v2575_v33, %v322_v35 }
 0x154   :  { %v412_v38 = vpop.f32.mrb[2].mxu0 }
 0x155   :  { %v413_v39 = vadd.f32 %v3698_v37, %v412_v38  ;;  %v2763_v40 = vpop.f32.mrb[3].mxu0 }
 0x156   :  { %v520_v41 = vpop.f32.mrb[2].mxu1 }
 0x157   :  { %424 = vrot.lane.b32.xlu0 %v413_v39, %s3447_s4  ;;  %v2774_v43 = vpop.f32.mrb[3].mxu1  ;;  %v416_v45 = vadd.f32 %v413_v39, %v3705_v44  ;;  %v521_v50 = vadd.f32 %v3711_v49, %v520_v41 }
 0x159   :  { %v2579_v46 = vmul.f32 -1.442695, %v416_v45  ;;  %v525_v54 = vrot.slane %v521_v50, 2  ;;  %v3450_v50 = vmov 1  }
 0x15b   :  { %334 = vperm.xlu0 %3139, %v132_v42   ;;  %3149 = vpow2.f32 %v2579_v46  ;;  %v527_v60 = vadd.f32 %v525_v54, %v3719_v59 }
 0x15d   :  { %v2581_v61 = vmul.f32 -1.442695, %v527_v60 }
 0x15f   :  { %3141 = vset.pattern.permute.xlu0 %v3448_v5 }
 0x165   :  { %v3150_v47 = vpop.eup %3149 }
 0x166   :  { %v420_v48 = vadd.f32 1.0, %v3150_v47 }
 0x168   :  { %3151 = vrcp.f32 %v420_v48 }
 0x169   :  { %3153 = vpow2.f32 %v2581_v61 }
 0x172   :  { %v3152_v51 = vpop.eup %3151 }
 0x173   :  { %v3154_v62 = vpop.eup %3153  ;;  %v434_v10 = vsub.f32 1.0, %v3152_v51  ;;  %v440_v12 = vmul.f32 0.0, %v3152_v51 }
 0x174   :  { %v531_v63 = vadd.f32 1.0, %v3154_v62 }
 0x176   :  { %3155 = vrcp.f32 %v531_v63 }
 0x180   :  { %v3156_v2 = vpop.eup %3155 }
 0x181   :  { %v544_v20 = vsub.f32 1.0, %v3156_v2  ;;  %v550_v25 = vmul.f32 0.0, %v3156_v2 }
 0x1c9   :  { %v425_v52 = vpop.permute.xlu0 %424 }
 0x1ca   :  { %v427_v53 = vmul.f32 %v3152_v51, %v425_v52 }
 0x1cc   :  { %429 = vrot.lane.b32.xlu1 %v427_v53, %s3447_s4 }
 0x1d0   :  { %534 = vrot.lane.b32.xlu1 %v525_v54, %s3447_s4 }
 0x1da   :  { %v335_v57 = vpop.permute.xlu0 %334 }
 0x1db   :  { %vm336_vm2 = vcmp.lt.s32.totalorder %v332_v56, %v335_v57 }
 0x1dc   :  { %v3716_v58 = vsel %vm336_vm2, 1, %v3446_v28 }
 0x1dd   :  { %444 = vperm.xlu1 %3140, %v3716_v58  }
 0x23e   :  { %v430_v0 = vpop.permute.xlu1 %429 }
 0x23f   :  { %v432_v1 = vadd.f32 %v430_v0, %v3705_v44 }
 0x241   :  { %3157 = vtanh.f32 %v432_v1  ;;  %v3451_v1 = vmov 6  }
 0x242   :  { %v535_v3 = vpop.permute.xlu1 %534  ;;  %3143 = vset.pattern.permute.xlu1 %v3451_v1 }
 0x243   :  { %v537_v4 = vmul.f32 %v3156_v2, %v535_v3 }
 0x245   :  { %539 = vrot.lane.b32.xlu1 %v537_v4, %s3447_s4 }
 0x24b   :  { %v3158_v6 = vpop.eup %3157 }
 0x24c   :  { %436 = vrot.lane.b32.xlu0 %v3158_v6, %s3449_s1 }
 0x25c   :  { %v3725_v7 = vpop.permute.xlu1 %444 }
 0x25d   :  { %vm446_vm3 = vcmp.eq.s32.totalorder %v3725_v7, 1 }
 0x2b7   :  { %v540_v8 = vpop.permute.xlu1 %539 }
 0x2b8   :  { %v542_v9 = vadd.f32 %v540_v8, %v3719_v59 }
 0x2ba   :  { %3159 = vtanh.f32 %v542_v9 }
 0x2be   :  { %v437_v11 = vpop.permute.xlu0 %436 }
 0x2bf   :  { %v439_v13 = vmul.f32 %v437_v11, %v434_v10 }
 0x2c1   :  { %v441_v14 = vadd.f32 %v440_v12, %v439_v13 }
 0x2c3   :  { %v3731_v15 = vsel %vm446_vm3, %v441_v14, 0.0 }
 0x2c4   :  { %v3160_v17 = vpop.eup %3159  ;;  %563 = vrot.lane.b32.xlu0 %v3731_v15, %s3449_s1  ;;  %v663_v6 = vrot.slane %v3731_v15, 6 }
 0x2c5   :  { %546 = vrot.lane.b32.xlu1 %v3160_v17, %s3449_s1 }
 0x2c8   :  { %553 = vperm.xlu0 %3141, %v3716_v58  }
 0x2cc   :  { %3142 = vset.pattern.permute.xlu0 %v3450_v50 }
 0x336   :  { %v3737_v18 = vpop.permute.xlu0 %563 }
 0x337   :  { %2784 = vmatmul.mubr.msk.f32.vlgmr.msra.gmra.mrb[4].mxu0 %vm168_vm0, %v3737_v18  ;;  %v547_v21 = vpop.permute.xlu1 %546 }
 0x338   :  { %v549_v26 = vmul.f32 %v547_v21, %v544_v20  ;;  %3015 = vmatpush3.bf16.msra.mxu0 %v3647_v16  ;;  %2805 = vmatprep.mubr.msk.f32.mxu0 %vm3444_vm1, %v3445_v24 }
 0x339   :  { %3016 = vmatprep.subr.bf16.mxu0 %v3443_v19 }
 0x33a   :  { %v551_v28 = vadd.f32 %v550_v25, %v549_v26 }
 0x33c   :  { %v557_v29 = vrot.slane %v551_v28, 6  ;;  %3018 = vmatpush3.bf16.msra.mxu0 %v3654_v23 }
 0x33d   :  { %3025 = vmatprep.subr.bf16.mxu0 %v3443_v19 }
 0x33e   :  { %558 = vrot.lane.b32.xlu1 %v557_v29, %s3449_s1 }
 0x347   :  { %v3748_v30 = vpop.permute.xlu0 %553 }
 0x348   :  { %vm555_vm4 = vcmp.eq.s32.totalorder %v3748_v30, 1 }
 0x3b0   :  { %v559_v32 = vpop.permute.xlu1 %558 }
 0x3b1   :  { %v3753_v33 = vsel %vm555_vm4, %v559_v32, 0.0 }
 0x3b2   :  { %2795 = vmatmul.mubr.msk.f32.vlgmr.msra.gmra.mrb[4].mxu1 %vm168_vm0, %v3753_v33  ;;  %v778_v3 = vrot.slane %v3753_v33, 4 }
 0x3b3   :  { %3021 = vmatpush3.bf16.msra.mxu1 %v3651_v22  ;;  %2816 = vmatprep.mubr.msk.f32.mxu1 %vm3444_vm1, %v3445_v24 }
 0x3b4   :  { %3022 = vmatprep.subr.bf16.mxu1 %v3443_v19 }
 0x3b7   :  { %3024 = vmatpush3.bf16.msra.mxu1 %v3662_v27 }
 0x3b8   :  { %3031 = vmatprep.subr.bf16.mxu1 %v3443_v19 }
 0x40a   :  { %v633_v34 = vpop.f32.mrb[4].mxu0 }
 0x40b   :  { %v634_v35 = vadd.f32 %v3698_v37, %v633_v34  ;;  %v2785_v38 = vpop.f32.mrb[5].mxu0 }
 0x40d   :  { %v638_v39 = vrot.slane %v634_v35, 6 }
 0x40f   :  { %647 = vrot.lane.b32.xlu1 %v638_v39, %s3447_s4  ;;  %v640_v40 = vadd.f32 %v638_v39, %v3705_v44 }
 0x411   :  { %v2583_v41 = vmul.f32 -1.442695, %v640_v40 }
 0x413   :  { %3161 = vpow2.f32 %v2583_v41 }
 0x41d   :  { %v3162_v42 = vpop.eup %3161 }
 0x41e   :  { %v644_v43 = vadd.f32 1.0, %v3162_v42 }
 0x420   :  { %3163 = vrcp.f32 %v644_v43 }
 0x42a   :  { %v3164_v45 = vpop.eup %3163 }
 0x42b   :  { %v657_v8 = vsub.f32 1.0, %v3164_v45  ;;  %v665_v10 = vmul.f32 %v3164_v45, %v663_v6 }
 0x481   :  { %v648_v46 = vpop.permute.xlu1 %647 }
 0x482   :  { %v650_v47 = vmul.f32 %v3164_v45, %v648_v46  ;;  %v3453_v45 = vmov 2  }
 0x484   :  { %652 = vrot.lane.b32.xlu0 %v650_v47, %s3447_s4 }
 0x485   :  { %v748_v48 = vpop.f32.mrb[4].mxu1 }
 0x486   :  { %v749_v51 = vadd.f32 %v3711_v49, %v748_v48  ;;  %v2796_v52 = vpop.f32.mrb[5].mxu1 }
 0x488   :  { %v753_v53 = vrot.slane %v749_v51, 4 }
 0x48a   :  { %762 = vrot.lane.b32.xlu1 %v753_v53, %s3447_s4  ;;  %v755_v54 = vadd.f32 %v753_v53, %v3719_v59 }
 0x48c   :  { %v2585_v55 = vmul.f32 -1.442695, %v755_v54 }
 0x48e   :  { %3165 = vpow2.f32 %v2585_v55 }
 0x498   :  { %v3166_v56 = vpop.eup %3165 }
 0x499   :  { %v759_v57 = vadd.f32 1.0, %v3166_v56 }
 0x49b   :  { %3167 = vrcp.f32 %v759_v57 }
 0x4a5   :  { %v3168_v62 = vpop.eup %3167 }
 0x4a6   :  { %v772_v26 = vsub.f32 1.0, %v3168_v62 }
 0x4f6   :  { %v653_v60 = vpop.permute.xlu0 %652 }
 0x4f7   :  { %v655_v61 = vadd.f32 %v653_v60, %v3705_v44 }
 0x4f9   :  { %3169 = vtanh.f32 %v655_v61 }
 0x4fc   :  { %v763_v63 = vpop.permute.xlu1 %762 }
 0x4fd   :  { %v765_v0 = vmul.f32 %v3168_v62, %v763_v63 }
 0x4ff   :  { %767 = vrot.lane.b32.xlu1 %v765_v0, %s3447_s4 }
 0x503   :  { %v3170_v2 = vpop.eup %3169 }
 0x504   :  { %659 = vrot.lane.b32.xlu0 %v3170_v2, %s3449_s1 }
 0x508   :  { %668 = vperm.xlu0 %3142, %v3716_v58  }
 0x50c   :  { %779 = vrot.lane.b32.xlu0 %v778_v3, %s3452_s15 }
 0x571   :  { %v768_v4 = vpop.permute.xlu1 %767 }
 0x572   :  { %v770_v5 = vadd.f32 %v768_v4, %v3719_v59 }
 0x574   :  { %3171 = vtanh.f32 %v770_v5 }
 0x576   :  { %v660_v9 = vpop.permute.xlu0 %659 }
 0x577   :  { %v662_v11 = vmul.f32 %v660_v9, %v657_v8  ;;  %v3454_v8 = vmov 5  }
 0x579   :  { %v666_v12 = vadd.f32 %v665_v10, %v662_v11 }
 0x57b   :  { %v672_v13 = vrot.slane %v666_v12, 2 }
 0x57d   :  { %673 = vrot.lane.b32.xlu1 %v672_v13, %s3449_s1 }
 0x57e   :  { %v3172_v14 = vpop.eup %3171 }
 0x581   :  { %774 = vrot.lane.b32.xlu1 %v3172_v14, %s3449_s1 }
 0x585   :  { %785 = vperm.xlu1 %3143, %v3716_v58  }
 0x587   :  { %v3781_v17 = vpop.permute.xlu0 %668 }
 0x588   :  { %vm670_vm5 = vcmp.eq.s32.totalorder %v3781_v17, 1 }
 0x589   :  { %3144 = vset.pattern.permute.xlu1 %v3453_v45 }
 0x58b   :  { %v780_v25 = vpop.permute.xlu0 %779 }
 0x58c   :  { %v782_v29 = vmul.f32 %v3168_v62, %v780_v25 }
 0x5ef   :  { %v3784_v20 = vpop.permute.xlu1 %673 }
 0x5f0   :  { %v3790_v21 = vsel %vm670_vm5, %v3784_v20, %v3737_v18 }
 0x5f1   :  { %2806 = vmatmul.mubr.msk.f32.vlgmr.msra.gmra.mrb[6].mxu0 %vm168_vm0, %v3790_v21  ;;  %v894_v60 = vrot.slane %v3790_v21, 4 }
 0x5f2   :  { %3027 = vmatpush3.bf16.msra.mxu0 %v3647_v16  ;;  %2827 = vmatprep.mubr.msk.f32.mxu0 %vm3444_vm1, %v3445_v24 }
 0x5f3   :  { %v775_v28 = vpop.permute.xlu1 %774  ;;  %3028 = vmatprep.subr.bf16.mxu0 %v3443_v19 }
 0x5f4   :  { %v777_v32 = vmul.f32 %v775_v28, %v772_v26 }
 0x5f6   :  { %v783_v34 = vadd.f32 %v782_v29, %v777_v32  ;;  %3030 = vmatpush3.bf16.msra.mxu0 %v3654_v23 }
 0x5f7   :  { %3037 = vmatprep.subr.bf16.mxu0 %v3443_v19 }
 0x5f8   :  { %v789_v18 = vrot.slane %v783_v34, 4 }
 0x5fa   :  { %790 = vrot.lane.b32.xlu0 %v789_v18, %s3449_s1 }
 0x604   :  { %v3801_v35 = vpop.permute.xlu1 %785 }
 0x605   :  { %vm787_vm6 = vcmp.eq.s32.totalorder %v3801_v35, 1 }
 0x66c   :  { %v3804_v38 = vpop.permute.xlu0 %790 }
 0x66d   :  { %v3810_v39 = vsel %vm787_vm6, %v3804_v38, %v3753_v33 }
 0x66e   :  { %2817 = vmatmul.mubr.msk.f32.vlgmr.msra.gmra.mrb[6].mxu1 %vm168_vm0, %v3810_v39  ;;  %v1010_v29 = vrot.slane %v3810_v39, 6 }
 0x66f   :  { %3033 = vmatpush3.bf16.msra.mxu1 %v3651_v22  ;;  %2838 = vmatprep.mubr.msk.f32.mxu1 %vm3444_vm1, %v3445_v24 }
 0x670   :  { %3034 = vmatprep.subr.bf16.mxu1 %v3443_v19 }
 0x673   :  { %3036 = vmatpush3.bf16.msra.mxu1 %v3662_v27 }
 0x674   :  { %3043 = vmatprep.subr.bf16.mxu1 %v3443_v19 }
 0x6c4   :  { %v864_v40 = vpop.f32.mrb[6].mxu0 }
 0x6c5   :  { %v865_v41 = vadd.f32 %v3698_v37, %v864_v40  ;;  %v2807_v42 = vpop.f32.mrb[7].mxu0 }
 0x6c7   :  { %v869_v43 = vrot.slane %v865_v41, 4 }
 0x6c9   :  { %878 = vrot.lane.b32.xlu1 %v869_v43, %s3447_s4  ;;  %v871_v46 = vadd.f32 %v869_v43, %v3705_v44 }
 0x6cb   :  { %v2587_v47 = vmul.f32 -1.442695, %v871_v46 }
 0x6cd   :  { %3173 = vpow2.f32 %v2587_v47 }
 0x6d7   :  { %v3174_v48 = vpop.eup %3173 }
 0x6d8   :  { %v875_v50 = vadd.f32 1.0, %v3174_v48 }
 0x6da   :  { %3175 = vrcp.f32 %v875_v50 }
 0x6e4   :  { %v3176_v51 = vpop.eup %3175 }
 0x6e5   :  { %v888_v10 = vsub.f32 1.0, %v3176_v51 }
 0x73b   :  { %v879_v52 = vpop.permute.xlu1 %878 }
 0x73c   :  { %v881_v53 = vmul.f32 %v3176_v51, %v879_v52 }
 0x73e   :  { %883 = vrot.lane.b32.xlu0 %v881_v53, %s3447_s4 }
 0x741   :  { %v980_v54 = vpop.f32.mrb[6].mxu1 }
 0x742   :  { %v981_v55 = vadd.f32 %v3711_v49, %v980_v54  ;;  %v2818_v56 = vpop.f32.mrb[7].mxu1 }
 0x743   :  { %v3456_v56 = vmov 4  }
 0x744   :  { %v985_v57 = vrot.slane %v981_v55, 6  ;;  %3148 = vset.pattern.permute.xlu0 %v3456_v56 }
 0x746   :  { %994 = vrot.lane.b32.xlu1 %v985_v57, %s3447_s4  ;;  %v987_v61 = vadd.f32 %v985_v57, %v3719_v59 }
 0x748   :  { %v2589_v62 = vmul.f32 -1.442695, %v987_v61 }
 0x74a   :  { %895 = vrot.lane.b32.xlu1 %v894_v60, %s3452_s15  ;;  %3177 = vpow2.f32 %v2589_v62 }
 0x74e   :  { %901 = vperm.xlu1 %3144, %v3716_v58  }
 0x752   :  { %3145 = vset.pattern.permute.xlu1 %v3454_v8 }
 0x754   :  { %v3178_v63 = vpop.eup %3177 }
 0x755   :  { %v991_v1 = vadd.f32 1.0, %v3178_v63 }
 0x7b0   :  { %v884_v0 = vpop.permute.xlu0 %883 }
 0x7b1   :  { %v886_v2 = vadd.f32 %v884_v0, %v3705_v44 }
 0x7b3   :  { %3179 = vtanh.f32 %v886_v2 }
 0x7b4   :  { %3181 = vrcp.f32 %v991_v1 }
 0x7b8   :  { %v995_v4 = vpop.permute.xlu1 %994 }
 0x7bc   :  { %v896_v9 = vpop.permute.xlu1 %895 }
 0x7bd   :  { %v3180_v3 = vpop.eup %3179  ;;  %v898_v12 = vmul.f32 %v3176_v51, %v896_v9 }
 0x7be   :  { %890 = vrot.lane.b32.xlu0 %v3180_v3, %s3449_s1  ;;  %v3182_v5 = vpop.eup %3181 }
 0x7bf   :  { %v997_v6 = vmul.f32 %v3182_v5, %v995_v4  ;;  %v1004_v42 = vsub.f32 1.0, %v3182_v5 }
 0x7c2   :  { %999 = vrot.lane.b32.xlu0 %v997_v6, %s3447_s4 }
 0x7cd   :  { %v3839_v34 = vpop.permute.xlu1 %901 }
 0x7ce   :  { %vm903_vm7 = vcmp.eq.s32.totalorder %v3839_v34, 1  ;;  %v678_v34 = vsel %vm670_vm5, %v3784_v20, 0.0  ;;  %v157_v20 = vld [vmem:[#allocation11] sm:$0xff] }
 0x830   :  { %v891_v11 = vpop.permute.xlu0 %890 }
 0x831   :  { %v893_v13 = vmul.f32 %v891_v11, %v888_v10 }
 0x833   :  { %v899_v14 = vadd.f32 %v898_v12, %v893_v13 }
 0x834   :  { %v1000_v25 = vpop.permute.xlu0 %999 }
 0x835   :  { %v905_v26 = vrot.slane %v899_v14, 4  ;;  %v1002_v28 = vadd.f32 %v1000_v25, %v3719_v59 }
 0x837   :  { %3183 = vtanh.f32 %v1002_v28  ;;  %906 = vrot.lane.b32.xlu0 %v905_v26, %s3449_s1 }
 0x83b   :  { %1011 = vrot.lane.b32.xlu0 %v1010_v29, %s3452_s15 }
 0x841   :  { %v3184_v32 = vpop.eup %3183 }
 0x842   :  { %1006 = vrot.lane.b32.xlu1 %v3184_v32, %s3449_s1 }
 0x846   :  { %1017 = vperm.xlu1 %3145, %v3716_v58  }
 0x8a9   :  { %v3842_v18 = vpop.permute.xlu0 %906 }
 0x8aa   :  { %v3848_v40 = vsel %vm903_vm7, %v3842_v18, %v3790_v21 }
 0x8ab   :  { %2828 = vmatmul.mubr.msk.f32.vlgmr.msra.gmra.mrb[8].mxu0 %vm168_vm0, %v3848_v40 }
 0x8ac   :  { %3039 = vmatpush3.bf16.msra.mxu0 %v3647_v16  ;;  %2849 = vmatprep.mubr.msk.f32.mxu0 %vm3444_vm1, %v3445_v24 }
 0x8ad   :  { %3040 = vmatprep.subr.bf16.mxu0 %v3443_v19  ;;  %v1012_v41 = vpop.permute.xlu0 %1011 }
 0x8ae   :  { %v1014_v45 = vmul.f32 %v3182_v5, %v1012_v41  ;;  %v1126_v5 = vrot.slane %v3848_v40, 2 }
 0x8b0   :  { %3042 = vmatpush3.bf16.msra.mxu0 %v3654_v23 }
 0x8b1   :  { %3049 = vmatprep.subr.bf16.mxu0 %v3443_v19 }
 0x8b4   :  { %v1007_v43 = vpop.permute.xlu1 %1006 }
 0x8b5   :  { %v1009_v21 = vmul.f32 %v1007_v43, %v1004_v42 }
 0x8b7   :  { %v1015_v46 = vadd.f32 %v1014_v45, %v1009_v21 }
 0x8b9   :  { %v1021_v47 = vrot.slane %v1015_v46, 2 }
 0x8bb   :  { %1022 = vrot.lane.b32.xlu0 %v1021_v47, %s3449_s1 }
 0x8c5   :  { %v3859_v48 = vpop.permute.xlu1 %1017 }
 0x8c6   :  { %vm1019_vm8 = vcmp.eq.s32.totalorder %v3859_v48, 1 }
 0x92d   :  { %v3862_v50 = vpop.permute.xlu0 %1022 }
 0x92e   :  { %v1025_v51 = vsel %vm1019_vm8, %v3862_v50, %v3810_v39  ;;  %v3455_v39 = vmov 3  }
 0x92f   :  { %2839 = vmatmul.mubr.msk.f32.vlgmr.msra.gmra.mrb[8].mxu1 %vm168_vm0, %v1025_v51  ;;  %3146 = vset.pattern.permute.xlu1 %v3455_v39 }
 0x930   :  { %3045 = vmatpush3.bf16.msra.mxu1 %v3651_v22  ;;  %2860 = vmatprep.mubr.msk.f32.mxu1 %vm3444_vm1, %v3445_v24 }
 0x931   :  { %3046 = vmatprep.subr.bf16.mxu1 %v3443_v19 }
 0x934   :  { %3048 = vmatpush3.bf16.msra.mxu1 %v3662_v27 }
 0x935   :  { %3055 = vmatprep.subr.bf16.mxu1 %v3443_v19 }
 0x97e   :  { %v1096_v52 = vpop.f32.mrb[8].mxu0 }
 0x97f   :  { %v1097_v53 = vadd.f32 %v3698_v37, %v1096_v52  ;;  %v2829_v54 = vpop.f32.mrb[9].mxu0 }
 0x981   :  { %v1101_v55 = vrot.slane %v1097_v53, 2 }
 0x983   :  { %1110 = vrot.lane.b32.xlu1 %v1101_v55, %s3447_s4  ;;  %v1103_v57 = vadd.f32 %v1101_v55, %v3705_v44 }
 0x985   :  { %v2591_v60 = vmul.f32 -1.442695, %v1103_v57 }
 0x987   :  { %3185 = vpow2.f32 %v2591_v60 }
 0x991   :  { %v3186_v61 = vpop.eup %3185 }
 0x992   :  { %v1107_v62 = vadd.f32 1.0, %v3186_v61 }
 0x994   :  { %3187 = vrcp.f32 %v1107_v62 }
 0x99e   :  { %v3188_v63 = vpop.eup %3187 }
 0x99f   :  { %v1120_v28 = vsub.f32 1.0, %v3188_v63 }
 0x9f5   :  { %v1111_v0 = vpop.permute.xlu1 %1110 }
 0x9f6   :  { %v1113_v1 = vmul.f32 %v3188_v63, %v1111_v0 }
 0x9f8   :  { %1115 = vrot.lane.b32.xlu0 %v1113_v1, %s3447_s4 }
 0xa02   :  { %v1212_v2 = vpop.f32.mrb[8].mxu1 }
 0xa03   :  { %v1213_v3 = vadd.f32 %v3711_v49, %v1212_v2  ;;  %v2840_v4 = vpop.f32.mrb[9].mxu1 }
 0xa05   :  { %1224 = vrot.lane.b32.xlu1 %v1213_v3, %s3447_s4  ;;  %v1216_v6 = vadd.f32 %v1213_v3, %v3719_v59 }
 0xa07   :  { %v2593_v8 = vmul.f32 -1.442695, %v1216_v6 }
 0xa09   :  { %1127 = vrot.lane.b32.xlu1 %v1126_v5, %s3452_s15  ;;  %3189 = vpow2.f32 %v2593_v8 }
 0xa0d   :  { %1133 = vperm.xlu1 %3146, %v3716_v58  }
 0xa11   :  { %3147 = vset.pattern.permute.xlu1 %v3456_v56 }
 0xa12   :  { %1246 = vperm.xlu1 %3147, %v3716_v58  }
 0xa13   :  { %v3190_v9 = vpop.eup %3189 }
 0xa14   :  { %v1220_v11 = vadd.f32 1.0, %v3190_v9 }
 0xa16   :  { %1240 = vrot.lane.b32.xlu1 %v1025_v51, %s3452_s15 }
 0xa6a   :  { %v1116_v10 = vpop.permute.xlu0 %1115 }
 0xa6b   :  { %v1118_v12 = vadd.f32 %v1116_v10, %v3705_v44 }
 0xa6d   :  { %3191 = vtanh.f32 %v1118_v12 }
 0xa6e   :  { %3193 = vrcp.f32 %v1220_v11 }
 0xa77   :  { %v3192_v13 = vpop.eup %3191  ;;  %v1225_v14 = vpop.permute.xlu1 %1224 }
 0xa78   :  { %1122 = vrot.lane.b32.xlu0 %v3192_v13, %s3449_s1  ;;  %v3194_v25 = vpop.eup %3193 }
 0xa79   :  { %v1227_v26 = vmul.f32 %v3194_v25, %v1225_v14  ;;  %v1234_v53 = vsub.f32 1.0, %v3194_v25 }
 0xa7b   :  { %v1128_v58 = vpop.permute.xlu1 %1127 }
 0xa7c   :  { %1229 = vrot.lane.b32.xlu0 %v1227_v26, %s3447_s4  ;;  %v1130_v32 = vmul.f32 %v3188_v63, %v1128_v58 }
 0xa8c   :  { %v3893_v46 = vpop.permute.xlu1 %1133 }
 0xa8d   :  { %vm1135_vm9 = vcmp.eq.s32.totalorder %v3893_v46, 1 }
 0xaea   :  { %v1123_v29 = vpop.permute.xlu0 %1122 }
 0xaeb   :  { %v1125_v41 = vmul.f32 %v1123_v29, %v1120_v28 }
 0xaed   :  { %v1131_v42 = vadd.f32 %v1130_v32, %v1125_v41 }
 0xaee   :  { %v1230_v43 = vpop.permute.xlu0 %1229 }
 0xaef   :  { %v1137_v45 = vrot.slane %v1131_v42, 6  ;;  %v1232_v44 = vadd.f32 %v1230_v43, %v3719_v59  ;;  %v3903_v59 = vpop.permute.xlu1 %1246 }
 0xaf0   :  { %vm1248_vm10 = vcmp.eq.s32.totalorder %v3903_v59, 1  ;;  %v155_v59 = vld [vmem:[%s4232_s10 + $0x10] sm:$0xff] }
 0xaf1   :  { %3195 = vtanh.f32 %v1232_v44  ;;  %1138 = vrot.lane.b32.xlu0 %v1137_v45, %s3449_s1 }
 0xaf3   :  { %v1241_v52 = vpop.permute.xlu1 %1240 }
 0xaf4   :  { %v1243_v55 = vmul.f32 %v3194_v25, %v1241_v52 }
 0xafb   :  { %v3196_v21 = vpop.eup %3195 }
 0xafc   :  { %1236 = vrot.lane.b32.xlu0 %v3196_v21, %s3449_s1 }
 0xb63   :  { %v3896_v47 = vpop.permute.xlu0 %1138 }
 0xb64   :  { %v1141_v51 = vsel %vm1135_vm9, %v3896_v47, %v3848_v40 }
 0xb65   :  { %2850 = vmatmul.mubr.msk.f32.vlgmr.msra.gmra.mrb[10].mxu0 %vm168_vm0, %v1141_v51 }
 0xb66   :  { %3051 = vmatpush3.bf16.msra.mxu0 %v3647_v16  ;;  %2871 = vmatprep.mubr.msk.f32.mxu0 %vm3444_vm1, %v3445_v24 }
 0xb67   :  { %3052 = vmatprep.subr.bf16.mxu0 %v3443_v19 }
 0xb6a   :  { %3054 = vmatpush3.bf16.msra.mxu0 %v3654_v23 }
 0xb6b   :  { %3061 = vmatprep.subr.bf16.mxu0 %v3443_v19 }
 0xb6e   :  { %v1237_v54 = vpop.permute.xlu0 %1236 }
 0xb6f   :  { %v1239_v40 = vmul.f32 %v1237_v54, %v1234_v53 }
 0xb71   :  { %v3911_v39 = vadd.f32 %v1243_v55, %v1239_v40 }
 0xb73   :  { %v3917_v56 = vsel %vm1248_vm10, %v3911_v39, %v1241_v52 }
 0xb74   :  { %1356 = vrot.lane.b32.xlu0 %v3917_v56, %s3449_s1  ;;  %v1456_v40 = vrot.slane %v3917_v56, 2 }
 0xbe6   :  { %v3921_v57 = vpop.permute.xlu0 %1356 }
 0xbe7   :  { %2861 = vmatmul.mubr.msk.f32.vlgmr.msra.gmra.mrb[10].mxu1 %vm168_vm0, %v3921_v57 }
 0xbe8   :  { %3057 = vmatpush3.bf16.msra.mxu1 %v3651_v22  ;;  %2882 = vmatprep.mubr.msk.f32.mxu1 %vm3444_vm1, %v3445_v24 }
 0xbe9   :  { %3058 = vmatprep.subr.bf16.mxu1 %v3443_v19 }
 0xbec   :  { %3060 = vmatpush3.bf16.msra.mxu1 %v3662_v27 }
 0xbed   :  { %3067 = vmatprep.subr.bf16.mxu1 %v3443_v19 }
 0xc38   :  { %v1320_v60 = vpop.f32.mrb[10].mxu0 }
 0xc39   :  { %v1321_v61 = vadd.f32 %v3698_v37, %v1320_v60  ;;  %v2851_v62 = vpop.f32.mrb[11].mxu0 }
 0xc3b   :  { %1332 = vrot.lane.b32.xlu1 %v1321_v61, %s3447_s4  ;;  %v1324_v63 = vadd.f32 %v1321_v61, %v3688_v31 }
 0xc3d   :  { %v2595_v0 = vmul.f32 -1.442695, %v1324_v63 }
 0xc3f   :  { %3197 = vpow2.f32 %v2595_v0 }
 0xc49   :  { %v3198_v1 = vpop.eup %3197 }
 0xc4a   :  { %v1328_v2 = vadd.f32 1.0, %v3198_v1 }
 0xc4c   :  { %3199 = vrcp.f32 %v1328_v2 }
 0xc56   :  { %v3200_v3 = vpop.eup %3199 }
 0xc57   :  { %v1342_v42 = vsub.f32 1.0, %v3200_v3 }
 0xcad   :  { %v1333_v4 = vpop.permute.xlu1 %1332 }
 0xcae   :  { %v1335_v5 = vmul.f32 %v3200_v3, %v1333_v4 }
 0xcb0   :  { %1337 = vrot.lane.b32.xlu0 %v1335_v5, %s3447_s4 }
 0xcba   :  { %v1426_v6 = vpop.f32.mrb[10].mxu1 }
 0xcbb   :  { %v1427_v8 = vadd.f32 %v3711_v49, %v1426_v6  ;;  %v2862_v9 = vpop.f32.mrb[11].mxu1 }
 0xcbd   :  { %v1431_v10 = vrot.slane %v1427_v8, 2 }
 0xcbf   :  { %1440 = vrot.lane.b32.xlu1 %v1431_v10, %s3447_s4  ;;  %v1433_v11 = vadd.f32 %v1431_v10, %v3693_v36 }
 0xcc1   :  { %v2597_v12 = vmul.f32 -1.442695, %v1433_v11 }
 0xcc3   :  { %1348 = vrot.lane.b32.xlu1 %v1141_v51, %s3452_s15  ;;  %3201 = vpow2.f32 %v2597_v12 }
 0xccd   :  { %v3202_v13 = vpop.eup %3201 }
 0xcce   :  { %v1437_v25 = vadd.f32 1.0, %v3202_v13 }
 0xd22   :  { %v1338_v14 = vpop.permute.xlu0 %1337 }
 0xd23   :  { %v1340_v26 = vadd.f32 %v1338_v14, %v3688_v31 }
 0xd25   :  { %3203 = vtanh.f32 %v1340_v26 }
 0xd26   :  { %3205 = vrcp.f32 %v1437_v25 }
 0xd2f   :  { %v3204_v58 = vpop.eup %3203 }
 0xd30   :  { %1344 = vrot.lane.b32.xlu0 %v3204_v58, %s3449_s1  ;;  %v3206_v28 = vpop.eup %3205 }
 0xd31   :  { %v1441_v29 = vpop.permute.xlu1 %1440  ;;  %v1450_v60 = vsub.f32 1.0, %v3206_v28  ;;  %v1458_v62 = vmul.f32 %v3206_v28, %v1456_v40 }
 0xd32   :  { %v1443_v32 = vmul.f32 %v3206_v28, %v1441_v29 }
 0xd34   :  { %1445 = vrot.lane.b32.xlu0 %v1443_v32, %s3447_s4 }
 0xd35   :  { %v1349_v41 = vpop.permute.xlu1 %1348 }
 0xd36   :  { %v1351_v45 = vmul.f32 %v3200_v3, %v1349_v41 }
 0xda2   :  { %v1345_v43 = vpop.permute.xlu0 %1344 }
 0xda3   :  { %v1347_v44 = vmul.f32 %v1345_v43, %v1342_v42 }
 0xda5   :  { %v3942_v21 = vadd.f32 %v1351_v45, %v1347_v44 }
 0xda6   :  { %v1446_v51 = vpop.permute.xlu0 %1445 }
 0xda7   :  { %v1448_v52 = vadd.f32 %v1446_v51, %v3693_v36  ;;  %v3948_v53 = vsel %vm1248_vm10, %v3942_v21, %v1349_v41  ;;  %v1354_v7 = vsel %vm1248_vm10, %v3942_v21, 0.0  ;;  %v156_v21 = vld [vmem:[%s4232_s10 + $0x18] sm:$0xff] }
 0xda8   :  { %1469 = vrot.lane.b32.xlu1 %v3948_v53, %s3449_s1 }
 0xda9   :  { %3207 = vtanh.f32 %v1448_v52 }
 0xdb3   :  { %v3208_v54 = vpop.eup %3207 }
 0xdb4   :  { %1452 = vrot.lane.b32.xlu0 %v3208_v54, %s3449_s1  ;;  %v1569_v54 = vrot.slane %v3948_v53, 6 }
 0xe1a   :  { %v3953_v55 = vpop.permute.xlu1 %1469 }
 0xe1b   :  { %2872 = vmatmul.mubr.msk.f32.vlgmr.msra.gmra.mrb[12].mxu0 %vm168_vm0, %v3953_v55 }
 0xe1c   :  { %3063 = vmatpush3.bf16.msra.mxu0 %v3647_v16  ;;  %2893 = vmatprep.mubr.msk.f32.mxu0 %vm3444_vm1, %v3445_v24 }
 0xe1d   :  { %3064 = vmatprep.subr.bf16.mxu0 %v3443_v19 }
 0xe20   :  { %3066 = vmatpush3.bf16.msra.mxu0 %v3654_v23 }
 0xe21   :  { %3073 = vmatprep.subr.bf16.mxu0 %v3443_v19 }
 0xe26   :  { %v1453_v61 = vpop.permute.xlu0 %1452 }
 0xe27   :  { %v1455_v63 = vmul.f32 %v1453_v61, %v1450_v60 }
 0xe29   :  { %v1459_v0 = vadd.f32 %v1458_v62, %v1455_v63 }
 0xe2b   :  { %v1461_v1 = vrot.slane %v1459_v0, 6 }
 0xe2d   :  { %1462 = vrot.lane.b32.xlu1 %v1461_v1, %s3449_s1 }
 0xe9f   :  { %v3965_v2 = vpop.permute.xlu1 %1462 }
 0xea0   :  { %v3971_v3 = vsel %vm1135_vm9, %v3965_v2, %v3921_v57 }
 0xea1   :  { %2883 = vmatmul.mubr.msk.f32.vlgmr.msra.gmra.mrb[12].mxu1 %vm168_vm0, %v3971_v3 }
 0xea2   :  { %3069 = vmatpush3.bf16.msra.mxu1 %v3651_v22  ;;  %2904 = vmatprep.mubr.msk.f32.mxu1 %vm3444_vm1, %v3445_v24 }
 0xea3   :  { %3070 = vmatprep.subr.bf16.mxu1 %v3443_v19 }
 0xea6   :  { %3072 = vmatpush3.bf16.msra.mxu1 %v3662_v27 }
 0xea7   :  { %3079 = vmatprep.subr.bf16.mxu1 %v3443_v19 }
 0xeee   :  { %v1539_v56 = vpop.f32.mrb[12].mxu0 }
 0xeef   :  { %v1540_v4 = vadd.f32 %v3698_v37, %v1539_v56  ;;  %v2873_v5 = vpop.f32.mrb[13].mxu0 }
 0xef1   :  { %v1544_v57 = vrot.slane %v1540_v4, 6  ;;  %v1680_v4 = vrot.slane %v3971_v3, 4 }
 0xef3   :  { %1553 = vrot.lane.b32.xlu0 %v1544_v57, %s3447_s4  ;;  %v1546_v6 = vadd.f32 %v1544_v57, %v3688_v31 }
 0xef5   :  { %v2599_v8 = vmul.f32 -1.442695, %v1546_v6 }
 0xef7   :  { %3209 = vpow2.f32 %v2599_v8 }
 0xf01   :  { %v3210_v9 = vpop.eup %3209 }
 0xf02   :  { %v1550_v10 = vadd.f32 1.0, %v3210_v9 }
 0xf04   :  { %3211 = vrcp.f32 %v1550_v10 }
 0xf0e   :  { %v3212_v11 = vpop.eup %3211 }
 0xf0f   :  { %v1563_v40 = vsub.f32 1.0, %v3212_v11  ;;  %v1571_v62 = vmul.f32 %v3212_v11, %v1569_v54 }
 0xf65   :  { %v1554_v12 = vpop.permute.xlu0 %1553 }
 0xf66   :  { %v1556_v13 = vmul.f32 %v3212_v11, %v1554_v12 }
 0xf68   :  { %1558 = vrot.lane.b32.xlu1 %v1556_v13, %s3447_s4 }
 0xf74   :  { %v1650_v14 = vpop.f32.mrb[12].mxu1 }
 0xf75   :  { %v1651_v25 = vadd.f32 %v3711_v49, %v1650_v14  ;;  %v2884_v26 = vpop.f32.mrb[13].mxu1 }
 0xf77   :  { %v1655_v58 = vrot.slane %v1651_v25, 4 }
 0xf79   :  { %1664 = vrot.lane.b32.xlu0 %v1655_v58, %s3447_s4  ;;  %v1657_v28 = vadd.f32 %v1655_v58, %v3693_v36 }
 0xf7b   :  { %v2601_v29 = vmul.f32 -1.442695, %v1657_v28 }
 0xf7d   :  { %3213 = vpow2.f32 %v2601_v29 }
 0xf87   :  { %v3214_v32 = vpop.eup %3213 }
 0xf88   :  { %v1661_v43 = vadd.f32 1.0, %v3214_v32 }
 0xfda   :  { %v1559_v41 = vpop.permute.xlu1 %1558 }
 0xfdb   :  { %v1561_v42 = vadd.f32 %v1559_v41, %v3688_v31 }
 0xfdd   :  { %3215 = vtanh.f32 %v1561_v42 }
 0xfde   :  { %3217 = vrcp.f32 %v1661_v43 }
 0xfe7   :  { %v3216_v45 = vpop.eup %3215 }
 0xfe8   :  { %1565 = vrot.lane.b32.xlu1 %v3216_v45, %s3449_s1  ;;  %v3218_v44 = vpop.eup %3217 }
 0xfe9   :  { %v1674_v8 = vsub.f32 1.0, %v3218_v44 }
 0xfeb   :  { %v1665_v51 = vpop.permute.xlu0 %1664 }
 0xfec   :  { %v1667_v52 = vmul.f32 %v3218_v44, %v1665_v51 }
 0xfee   :  { %1669 = vrot.lane.b32.xlu0 %v1667_v52, %s3447_s4 }
0x105a   :  { %v1566_v60 = vpop.permute.xlu1 %1565 }
0x105b   :  { %v1568_v61 = vmul.f32 %v1566_v60, %v1563_v40 }
0x105d   :  { %v1572_v63 = vadd.f32 %v1571_v62, %v1568_v61 }
0x105f   :  { %v1574_v0 = vrot.slane %v1572_v63, 2 }
0x1060   :  { %v1670_v1 = vpop.permute.xlu0 %1669 }
0x1061   :  { %v1672_v56 = vadd.f32 %v1670_v1, %v3693_v36  ;;  %1575 = vrot.lane.b32.xlu1 %v1574_v0, %s3449_s1 }
0x1063   :  { %3219 = vtanh.f32 %v1672_v56 }
0x1065   :  { %1681 = vrot.lane.b32.xlu1 %v1680_v4, %s3452_s15 }
0x106d   :  { %v3220_v5 = vpop.eup %3219 }
0x106e   :  { %1676 = vrot.lane.b32.xlu0 %v3220_v5, %s3449_s1 }
0x10d3   :  { %v3997_v53 = vpop.permute.xlu1 %1575 }
0x10d4   :  { %v4003_v57 = vsel %vm1019_vm8, %v3997_v53, %v3953_v55  ;;  %v1580_v46 = vsel %vm1019_vm8, %v3997_v53, 0.0 }
0x10d5   :  { %2894 = vmatmul.mubr.msk.f32.vlgmr.msra.gmra.mrb[14].mxu0 %vm168_vm0, %v4003_v57  ;;  %v1792_v45 = vrot.slane %v4003_v57, 4 }
0x10d6   :  { %3075 = vmatpush3.bf16.msra.mxu0 %v3647_v16  ;;  %2915 = vmatprep.mubr.msk.f32.mxu0 %vm3444_vm1, %v3445_v24 }
0x10d7   :  { %3076 = vmatprep.subr.bf16.mxu0 %v3443_v19  ;;  %v1682_v6 = vpop.permute.xlu1 %1681 }
0x10d8   :  { %v1684_v10 = vmul.f32 %v3218_v44, %v1682_v6 }
0x10da   :  { %3078 = vmatpush3.bf16.msra.mxu0 %v3654_v23 }
0x10e0   :  { %v1677_v9 = vpop.permute.xlu0 %1676 }
0x10e1   :  { %v1679_v11 = vmul.f32 %v1677_v9, %v1674_v8 }
0x10e3   :  { %v1685_v12 = vadd.f32 %v1684_v10, %v1679_v11 }
0x10e5   :  { %v1687_v55 = vrot.slane %v1685_v12, 4 }
0x10e7   :  { %1688 = vrot.lane.b32.xlu0 %v1687_v55, %s3449_s1 }
0x1159   :  { %v4013_v13 = vpop.permute.xlu0 %1688 }
0x115a   :  { %v4019_v16 = vsel %vm903_vm7, %v4013_v13, %v3971_v3 }
0x115b   :  { %2905 = vmatmul.mubr.msk.f32.vlgmr.msra.gmra.mrb[14].mxu1 %vm168_vm0, %v4019_v16  ;;  %v1904_v11 = vrot.slane %v4019_v16, 6 }
0x115c   :  { %3081 = vmatpush3.bf16.msra.mxu1 %v3651_v22  ;;  %2926 = vmatprep.mubr.msk.f32.mxu1 %vm3444_vm1, %v3445_v24 }
0x115d   :  { %3082 = vmatprep.subr.bf16.mxu1 %v3443_v19 }
0x1160   :  { %3084 = vmatpush3.bf16.msra.mxu1 %v3662_v27 }
0x1161   :  { %3101 = vmatprep.subr.bf16.mxu1 %v3443_v19 }
0x11a8   :  { %v1762_v23 = vpop.f32.mrb[14].mxu0 }
0x11a9   :  { %v1763_v14 = vadd.f32 %v3698_v37, %v1762_v23  ;;  %v2895_v25 = vpop.f32.mrb[15].mxu0 }
0x11ab   :  { %v1767_v3 = vrot.slane %v1763_v14, 4 }
0x11ad   :  { %1776 = vrot.lane.b32.xlu1 %v1767_v3, %s3447_s4  ;;  %v1769_v26 = vadd.f32 %v1767_v3, %v3688_v31 }
0x11af   :  { %v2603_v58 = vmul.f32 -1.442695, %v1769_v26 }
0x11b1   :  { %3221 = vpow2.f32 %v2603_v58 }
0x11bb   :  { %v3222_v22 = vpop.eup %3221 }
0x11bc   :  { %v1773_v28 = vadd.f32 1.0, %v3222_v22 }
0x11be   :  { %3223 = vrcp.f32 %v1773_v28 }
0x11c8   :  { %v3224_v29 = vpop.eup %3223 }
0x11c9   :  { %v1786_v1 = vsub.f32 1.0, %v3224_v29 }
0x121f   :  { %v1777_v32 = vpop.permute.xlu1 %1776 }
0x1220   :  { %v1779_v41 = vmul.f32 %v3224_v29, %v1777_v32 }
0x1222   :  { %1781 = vrot.lane.b32.xlu0 %v1779_v41, %s3447_s4  ;;  %v3245_v41 = vld [vmem:[%s4227_s5] ss:$0 sm:$0xff] }
0x122e   :  { %v1874_v27 = vpop.f32.mrb[14].mxu1 }
0x122f   :  { %v1875_v42 = vadd.f32 %v3711_v49, %v1874_v27  ;;  %v2906_v37 = vpop.f32.mrb[15].mxu1 }
0x1231   :  { %v1879_v43 = vrot.slane %v1875_v42, 6 }
0x1233   :  { %1888 = vrot.lane.b32.xlu1 %v1879_v43, %s3447_s4  ;;  %v1881_v44 = vadd.f32 %v1879_v43, %v3693_v36 }
0x1235   :  { %v2605_v51 = vmul.f32 -1.442695, %v1881_v44 }
0x1237   :  { %1793 = vrot.lane.b32.xlu1 %v1792_v45, %s3452_s15  ;;  %3225 = vpow2.f32 %v2605_v51 }
0x1241   :  { %v3226_v52 = vpop.eup %3225 }
0x1242   :  { %v1885_v60 = vadd.f32 1.0, %v3226_v52 }
0x1294   :  { %v1782_v54 = vpop.permute.xlu0 %1781 }
0x1295   :  { %v1784_v40 = vadd.f32 %v1782_v54, %v3688_v31 }
0x1297   :  { %3227 = vtanh.f32 %v1784_v40 }
0x1298   :  { %3229 = vrcp.f32 %v1885_v60  ;;  %v3246_v60 = vld [vmem:[%s4231_s9] ss:$0 sm:$0xff] }
0x12a1   :  { %v3228_v49 = vpop.eup %3227 }
0x12a2   :  { %1788 = vrot.lane.b32.xlu0 %v3228_v49, %s3449_s1  ;;  %v3230_v61 = vpop.eup %3229 }
0x12a3   :  { %v1898_v25 = vsub.f32 1.0, %v3230_v61 }
0x12a5   :  { %v1889_v62 = vpop.permute.xlu1 %1888 }
0x12a6   :  { %v1891_v63 = vmul.f32 %v3230_v61, %v1889_v62 }
0x12a8   :  { %1893 = vrot.lane.b32.xlu0 %v1891_v63, %s3447_s4 }
0x12a9   :  { %v1794_v0 = vpop.permute.xlu1 %1793 }
0x12aa   :  { %v1796_v4 = vmul.f32 %v3224_v29, %v1794_v0 }
0x1314   :  { %v1789_v56 = vpop.permute.xlu0 %1788 }
0x1315   :  { %v1791_v5 = vmul.f32 %v1789_v56, %v1786_v1 }
0x1317   :  { %v1797_v6 = vadd.f32 %v1796_v4, %v1791_v5 }
0x1319   :  { %v1799_v8 = vrot.slane %v1797_v6, 4 }
0x131a   :  { %v1894_v9 = vpop.permute.xlu0 %1893 }
0x131b   :  { %v1896_v10 = vadd.f32 %v1894_v9, %v3693_v36  ;;  %1800 = vrot.lane.b32.xlu1 %v1799_v8, %s3449_s1 }
0x131d   :  { %3231 = vtanh.f32 %v1896_v10 }
0x131f   :  { %1905 = vrot.lane.b32.xlu1 %v1904_v11, %s3452_s15 }
0x1327   :  { %v3232_v12 = vpop.eup %3231 }
0x1328   :  { %1900 = vrot.lane.b32.xlu0 %v3232_v12, %s3449_s1 }
0x138d   :  { %v4046_v55 = vpop.permute.xlu1 %1800 }
0x138e   :  { %v4052_v23 = vsel %vm787_vm6, %v4046_v55, %v4003_v57 }
0x138f   :  { %2916 = vmatmul.mubr.msk.f32.vlgmr.msra.gmra.mrb[16].mxu0 %vm168_vm0, %v4052_v23  ;;  %v2016_v62 = vrot.slane %v4052_v23, 2 }
0x1391   :  { %v1906_v14 = vpop.permute.xlu1 %1905 }
0x1392   :  { %v1908_v26 = vmul.f32 %v3230_v61, %v1906_v14 }
0x139a   :  { %v1901_v3 = vpop.permute.xlu0 %1900 }
0x139b   :  { %v1903_v58 = vmul.f32 %v1901_v3, %v1898_v25 }
0x139d   :  { %v1909_v22 = vadd.f32 %v1908_v26, %v1903_v58 }
0x139f   :  { %v1911_v28 = vrot.slane %v1909_v22, 2 }
0x13a1   :  { %1912 = vrot.lane.b32.xlu0 %v1911_v28, %s3449_s1  ;;  %v1692_v28 = vsel %vm903_vm7, %v4013_v13, 0.0  ;;  %v1026_v13 = vsel %vm1019_vm8, %v3862_v50, 0.0  ;;  %v1142_v50 = vsel %vm1135_vm9, %v3896_v47, 0.0  ;;  %v2149_v47 = vrot.slane %v1580_v46, 6 }
0x1413   :  { %v1913_v29 = vpop.permute.xlu0 %1912 }
0x1414   :  { %v1915_v32 = vsel %vm670_vm5, %v1913_v29, %v4019_v16 }
0x1415   :  { %2927 = vmatmul.mubr.msk.f32.vlgmr.msra.gmra.mrb[16].mxu1 %vm168_vm0, %v1915_v32 }
0x1416   :  { %2959 = vmatprep.mubr.msk.f32.mxu1 %vm3444_vm1, %v3445_v24 }
0x1462   :  { %v1986_v57 = vpop.f32.mrb[16].mxu0 }
0x1463   :  { %v1987_v27 = vadd.f32 %v3245_v41, %v1986_v57  ;;  %v2917_v42 = vpop.f32.mrb[17].mxu0  ;;  %v2178_v57 = vrot.slane %v1692_v28, 4  ;;  %v1467_v41 = vsel %vm1135_vm9, %v3965_v2, 0.0  ;;  %v910_v2 = vsel %vm903_vm7, %v3842_v18, 0.0 }
0x1464   :  { %v2183_v42 = vrot.slane %v1467_v41, 2  ;;  %v2144_v18 = vrot.slane %v1142_v50, 2  ;;  %v3097_v50 = vpack.c.bf16 %v156_v21, %v155_v59 }
0x1465   :  { %v1991_v37 = vrot.slane %v1987_v27, 2 }
0x1467   :  { %2000 = vrot.lane.b32.xlu1 %v1991_v37, %s3447_s4  ;;  %v1993_v43 = vadd.f32 %v1991_v37, %v3688_v31 }
0x1469   :  { %v2607_v45 = vmul.f32 -1.442695, %v1993_v43  ;;  %v794_v43 = vsel %vm787_vm6, %v3804_v38, 0.0  ;;  %v2134_v38 = vrot.slane %v678_v34, 6 }
0x146b   :  { %3233 = vpow2.f32 %v2607_v45  ;;  %v2139_v45 = vrot.slane %v910_v2, 4 }
0x1475   :  { %v3234_v16 = vpop.eup %3233 }
0x1476   :  { %v1997_v44 = vadd.f32 1.0, %v3234_v16  ;;  %v1804_v16 = vsel %vm787_vm6, %v4046_v55, 0.0 }
0x1477   :  { %v2154_v17 = vrot.slane %v1804_v16, 4 }
0x1478   :  { %3235 = vrcp.f32 %v1997_v44  ;;  %v158_v44 = vld [vmem:[#allocation11 + $0x8] sm:$0xff] }
0x1482   :  { %v3236_v51 = vpop.eup %3235 }
0x1483   :  { %v2010_v12 = vsub.f32 1.0, %v3236_v51 }
0x14d9   :  { %v2001_v52 = vpop.permute.xlu1 %2000 }
0x14da   :  { %v2003_v54 = vmul.f32 %v3236_v51, %v2001_v52  ;;  %v159_v52 = vld [vmem:[#allocation11 + $0x10] sm:$0xff] }
0x14dc   :  { %2005 = vrot.lane.b32.xlu0 %v2003_v54, %s3447_s4  ;;  %v160_v54 = vld [vmem:[#allocation11 + $0x18] sm:$0xff] }
0x14e8   :  { %v2098_v40 = vpop.f32.mrb[16].mxu1 }
0x14e9   :  { %v2099_v49 = vadd.f32 %v3246_v60, %v2098_v40  ;;  %v2928_v61 = vpop.f32.mrb[17].mxu1  ;;  %v3089_v40 = vpack.c.bf16 %v160_v54, %v159_v52 }
0x14ea   :  { %v154_v61 = vld [vmem:[%s4232_s10 + $0x8] sm:$0xff] }
0x14eb   :  { %2110 = vrot.lane.b32.xlu1 %v2099_v49, %s3447_s4  ;;  %v2102_v63 = vadd.f32 %v2099_v49, %v3693_v36  ;;  %v153_v49 = vld [vmem:[%s4232_s10] sm:$0xff] }
0x14ed   :  { %v2609_v0 = vmul.f32 -1.442695, %v2102_v63 }
0x14ef   :  { %2017 = vrot.lane.b32.xlu1 %v2016_v62, %s3452_s15  ;;  %3237 = vpow2.f32 %v2609_v0  ;;  %v3093_v62 = vpack.c.bf16 %v154_v61, %v153_v49 }
0x14f9   :  { %v3238_v1 = vpop.eup %3237 }
0x14fa   :  { %v2106_v4 = vadd.f32 1.0, %v3238_v1 }
0x154e   :  { %v2006_v56 = vpop.permute.xlu0 %2005 }
0x154f   :  { %v2008_v5 = vadd.f32 %v2006_v56, %v3688_v31 }
0x1551   :  { %3239 = vtanh.f32 %v2008_v5 }
0x1552   :  { %3241 = vrcp.f32 %v2106_v4 }
0x155b   :  { %v3240_v6 = vpop.eup %3239 }
0x155c   :  { %2012 = vrot.lane.b32.xlu0 %v3240_v6, %s3449_s1  ;;  %v4078_v8 = vpop.eup %3241 }
0x155d   :  { %v2111_v9 = vpop.permute.xlu1 %2110  ;;  %v2120_v63 = vsub.f32 1.0, %v4078_v8 }
0x155e   :  { %v2113_v10 = vmul.f32 %v4078_v8, %v2111_v9 }
0x1560   :  { %2115 = vrot.lane.b32.xlu0 %v2113_v10, %s3447_s4 }
0x1561   :  { %v2018_v11 = vpop.permute.xlu1 %2017 }
0x1562   :  { %v2020_v25 = vmul.f32 %v3236_v51, %v2018_v11  ;;  %v3085_v51 = vpack.c.bf16 %v158_v44, %v157_v20 }
0x1564   :  { %3103 = vmatpush3.bf16.msra.mxu1 %v3085_v51  ;;  %3086 = vmatprep.subr.bf16.mxu0 %v3085_v51 }
0x1565   :  { %3088 = vmatpush3.bf16.msra.mxu0 %v3085_v51  ;;  %3104 = vmatprep.subr.bf16.mxu1 %v3443_v19 }
0x1566   :  { %3090 = vmatprep.subr.bf16.mxu0 %v3089_v40 }
0x1568   :  { %3106 = vmatpush3.bf16.msra.mxu1 %v3089_v40 }
0x1569   :  { %3092 = vmatpush3.bf16.msra.mxu0 %v3089_v40  ;;  %3107 = vmatprep.subr.bf16.mxu1 %v3443_v19 }
0x156a   :  { %3094 = vmatprep.subr.bf16.mxu0 %v3093_v62 }
0x15ce   :  { %v2013_v14 = vpop.permute.xlu0 %2012 }
0x15cf   :  { %v2015_v3 = vmul.f32 %v2013_v14, %v2010_v12 }
0x15d1   :  { %v2021_v26 = vadd.f32 %v2020_v25, %v2015_v3 }
0x15d2   :  { %v2116_v58 = vpop.permute.xlu0 %2115 }
0x15d3   :  { %v2023_v31 = vrot.slane %v2021_v26, 6  ;;  %v2118_v22 = vadd.f32 %v2116_v58, %v3693_v36  ;;  %v1916_v36 = vsel %vm670_vm5, %v1913_v29, 0.0  ;;  %v2188_v29 = vrot.slane %v1026_v13, 6 }
0x15d4   :  { %v2173_v37 = vrot.slane %v1916_v36, 6 }
0x15d5   :  { %3243 = vtanh.f32 %v2118_v22  ;;  %2024 = vrot.lane.b32.xlu1 %v2023_v31, %s3449_s1 }
0x15d9   :  { %2126 = vrot.lane.b32.xlu1 %v1915_v32, %s3452_s15  ;;  %v2197_v32 = vrot.slane %v3753_v33, 2  ;;  %v2193_v33 = vrot.slane %v794_v43, 4 }
0x15dd   :  { %2179 = vrot.lane.b32.xlu1 %v2178_v57, %s3452_s15 }
0x15df   :  { %v3244_v27 = vpop.eup %3243 }
0x15e0   :  { %2122 = vrot.lane.b32.xlu0 %v3244_v27, %s3449_s1 }
0x15e1   :  { %2184 = vrot.lane.b32.xlu1 %v2183_v42, %s3452_s15 }
0x15e4   :  { %2174 = vrot.lane.b32.xlu0 %v2173_v37, %s3452_s15 }
0x15e5   :  { %2198 = vrot.lane.b32.xlu1 %v2197_v32, %s3452_s15 }
0x15e8   :  { %2189 = vrot.lane.b32.xlu0 %v2188_v29, %s3452_s15 }
0x15e9   :  { %2140 = vrot.lane.b32.xlu1 %v2139_v45, %s3452_s15 }
0x15ec   :  { %2194 = vrot.lane.b32.xlu0 %v2193_v33, %s3452_s15 }
0x15ed   :  { %2145 = vrot.lane.b32.xlu1 %v2144_v18, %s3452_s15 }
0x15f0   :  { %2135 = vrot.lane.b32.xlu0 %v2134_v38, %s3452_s15 }
0x15f4   :  { %2150 = vrot.lane.b32.xlu0 %v2149_v47, %s3452_s15 }
0x15f8   :  { %2155 = vrot.lane.b32.xlu0 %v2154_v17, %s3452_s15 }
0x1647   :  { %v4128_v48 = vpop.permute.xlu1 %2024 }
0x1648   :  { %v2028_v35 = vsel %vm555_vm4, %v4128_v48, 0.0  ;;  %v2027_v34 = vsel %vm555_vm4, %v4128_v48, %v4052_v23 }
0x1649   :  { %v2159_v53 = vrot.slane %v2028_v35, 2 }
0x164b   :  { %2160 = vrot.lane.b32.xlu1 %v2159_v53, %s3452_s15  ;;  %v2127_v55 = vpop.permute.xlu1 %2126 }
0x164c   :  { %v2129_v1 = vmul.f32 %v4078_v8, %v2127_v55  ;;  %v1250_v8 = vsel %vm1248_vm10, %v3911_v39, 0.0 }
0x164f   :  { %v2180_v60 = vpop.permute.xlu1 %2179 }
0x1652   :  { %v2123_v0 = vpop.permute.xlu0 %2122 }
0x1653   :  { %v2125_v56 = vmul.f32 %v2123_v0, %v2120_v63  ;;  %v2185_v4 = vpop.permute.xlu1 %2184 }
0x1655   :  { %v2130_v5 = vadd.f32 %v2129_v1, %v2125_v56 }
0x1656   :  { %v2175_v6 = vpop.permute.xlu0 %2174 }
0x1657   :  { %v2132_v9 = vsel %vm446_vm3, %v2130_v5, 0.0  ;;  %v2199_v11 = vpop.permute.xlu1 %2198  ;;  %v2131_v31 = vsel %vm446_vm3, %v2130_v5, %v2127_v55 }
0x1658   :  { %v2201_v10 = vsel %vm2163_vm11, %v2132_v9, %v2175_v6 }
0x1659   :  { %v2202_v12 = vsel %vm2165_vm12, %v2201_v10, %v2180_v60 }
0x165a   :  { %v2190_v14 = vpop.permute.xlu0 %2189  ;;  %v2203_v25 = vsel %vm2167_vm13, %v2202_v12, %v2185_v4 }
0x165b   :  { %2209 = vrot.lane.b32.xlu0 %v2203_v25, %s3449_s1  ;;  %v2204_v3 = vsel %vm2163_vm11, %v1250_v8, %v2190_v14  ;;  %v2141_v26 = vpop.permute.xlu1 %2140 }
0x165e   :  { %v2195_v58 = vpop.permute.xlu0 %2194 }
0x165f   :  { %v2205_v22 = vsel %vm2165_vm12, %v2204_v3, %v2195_v58  ;;  %2388 = vrot.lane.b32.xlu0 %v2131_v31, %s3449_s1  ;;  %v2146_v39 = vpop.permute.xlu1 %2145 }
0x1660   :  { %v2206_v28 = vsel %vm2167_vm13, %v2205_v22, %v2199_v11 }
0x1661   :  { %2211 = vrot.lane.b32.xlu1 %v2206_v28, %s3449_s1 }
0x1662   :  { %v2136_v57 = vpop.permute.xlu0 %2135 }
0x1663   :  { %v2164_v41 = vsel %vm2163_vm11, %v3731_v15, %v2136_v57 }
0x1664   :  { %v2166_v27 = vsel %vm2165_vm12, %v2164_v41, %v2141_v26 }
0x1665   :  { %v2168_v42 = vsel %vm2167_vm13, %v2166_v27, %v2146_v39 }
0x1666   :  { %v2151_v36 = vpop.permute.xlu0 %2150  ;;  %2294 = vrot.lane.b32.xlu1 %v2168_v42, %s3449_s1 }
0x1667   :  { %v2169_v37 = vsel %vm2163_vm11, %v1354_v7, %v2151_v36 }
0x166a   :  { %v2156_v13 = vpop.permute.xlu0 %2155 }
0x166b   :  { %v2170_v32 = vsel %vm2165_vm12, %v2169_v37, %v2156_v13 }
0x16bd   :  { %v2161_v2 = vpop.permute.xlu1 %2160 }
0x16be   :  { %v2171_v15 = vsel %vm2167_vm13, %v2170_v32, %v2161_v2 }
0x16bf   :  { %2296 = vrot.lane.b32.xlu0 %v2171_v15, %s3449_s1 }
0x16cd   :  { %v2210_v29 = vpop.permute.xlu0 %2209 }
0x16ce   :  { %2937 = vmatprep.mubr.msk.f32.mxu0 %vm168_vm0, %v2210_v29 }
0x16d1   :  { %v2389_v43 = vpop.permute.xlu0 %2388 }
0x16d2   :  { %2960 = vmatmul.mubr.msk.f32.vlgmr.msra.gmra.mrb[18].mxu1 %vm168_vm0, %v2389_v43 }
0x16d3   :  { %3109 = vmatpush3.bf16.msra.mxu1 %v3093_v62  ;;  %v2212_v45 = vpop.permute.xlu1 %2211  ;;  %2970 = vmatprep.mubr.msk.f32.mxu1 %vm3444_vm1, %v3445_v24 }
0x16d4   :  { %2938 = vmatmul.mubr.msk.f32.vlgmr.msra.gmra.mrb[18].mxu0 %vm168_vm0, %v2212_v45  ;;  %3110 = vmatprep.subr.bf16.mxu1 %v3443_v19  ;;  %v2614_v19 = vld [vmem:[%s4234_s12] ss:$0 sm:$0xff] }
0x16d5   :  { %3096 = vmatpush3.bf16.msra.mxu0 %v3093_v62 }
0x16d6   :  { %3098 = vmatprep.subr.bf16.mxu0 %v3097_v50 }
0x16d7   :  { %3112 = vmatpush3.bf16.msra.mxu1 %v3097_v50 }
0x16d8   :  { %v2295_v33 = vpop.permute.xlu1 %2294 }
0x16d9   :  { %2948 = vmatprep.mubr.msk.f32.mxu0 %vm168_vm0, %v2295_v33  ;;  %3100 = vmatpush3.bf16.msra.mxu0 %v3097_v50 }
0x16da   :  { %2971 = vmatmul.mubr.msk.f32.vlgmr.msra.gmra.mrb[20].mxu1 %vm168_vm0, %v2027_v34 }
0x1731   :  { %v2297_v18 = vpop.permute.xlu0 %2296 }
0x1732   :  { %2949 = vmatmul.mubr.msk.f32.vlgmr.msra.gmra.mrb[18].mxu0 %vm168_vm0, %v2297_v18 }
0x17a5   :  { %v2458_v24 = vpop.f32.mrb[18].mxu1 }
0x17a6   :  { %v2961_v38 = vpop.f32.mrb[19].mxu1 }
0x17ad   :  { %v2531_v46 = vpop.f32.mrb[20].mxu1 }
0x17ae   :  { %v2532_v47 = vadd.f32 %v2531_v46, %v2458_v24  ;;  %v2972_v30 = vpop.f32.mrb[21].mxu1 }
0x17b0   :  { %v2535_v23 = vadd.f32 %v2614_v19, %v2532_v47 }
0x17b2   :  { %2537 = vst.msk [vmem:[#allocation14] sm:$0x3] %vm2536_vm14, %v2535_v23 }
0x17b3   :  { %3390 = shalt.err (!%p3387_p10)
}
0x17b4   :  { %s3391_s12 = scalar_lea.hbm %s4236_s14, 32 }
0x17b5   :  { %p3392_p11 = scmp.ne.s32.totalorder %s4236_s14, %s3391_s12  ;;  %p3395_p12 = scmp.lt.u32.totalorder %s3391_s12, %s4236_s14 }
0x17b7   :  { %p3397_p13 = pnand %p3395_p12, %p3392_p11 }
0x17b9   :  { %3400 = shalt.err (!%p3397_p13)
}
0x17ba   :  { %2559 = dma.vmem_to_hbm [thread:$0]  %s2557_s2, 32, %s4236_s14, [#allocation15]  }
0x17bb   :  { %s3458_s15 = smov [#allocation13]  }
0x17bc   :  { %s2543_s17 = sshll.u32 %s3458_s15, 4  ;;  %s2544_s17 = int_to_ptr.vmem [resolvable:$true] %s2543_s17 }
0x17bd   :  { %s3401_s18 = scalar_lea.vmem %s2544_s17, 256  ;;  %p3406_p1 = scmp.lt.s32.totalorder %s2544_s17, %s2544_s17 }
0x17be   :  { %p3402_p0 = scmp.ne.s32.totalorder %s2544_s17, %s3401_s18  ;;  %p3407_p2 = scmp.lt.s32.totalorder %s3401_s18, %s3401_s18 }
0x17c0   :  { %p3408_p3 = por %p3407_p2, %p3406_p1 }
0x17c2   :  { %p3409_p4 = pnand %p3408_p3, %p3402_p0 }
0x1805   :  { %v2950_v16 = vpop.f32.mrb[18].mxu0 }
0x1806   :  { %v2384_v17 = vadd.f32 %v2950_v16, %v2614_v19  ;;  %v2368_v20 = vpop.f32.mrb[19].mxu0 }
0x1807   :  { %v2383_v44 = vadd.f32 %v2614_v19, %v2368_v20 }
0x1808   :  { %2386 = vst.msk [vmem:[#allocation13 + $0x8] sm:$0xff] %vm168_vm0, %v2384_v17 }
0x1809   :  { %2385 = vst.msk [vmem:[#allocation13] sm:$0xff] %vm168_vm0, %v2383_v44 }
0x180a   :  { %3412 = shalt.err (!%p3409_p4)
}
0x180b   :  { %s3413_s5 = scalar_lea.hbm %s4235_s13, 256 }
0x180c   :  { %p3414_p5 = scmp.ne.s32.totalorder %s4235_s13, %s3413_s5  ;;  %p3417_p6 = scmp.lt.u32.totalorder %s3413_s5, %s4235_s13 }
0x180e   :  { %p3419_p7 = pnand %p3417_p6, %p3414_p5 }
0x1810   :  { %3422 = shalt.err (!%p3419_p7)
}
0x1811   :  { %2549 = dma.vmem_to_hbm [thread:$0]  %s2544_s17, 256, %s4235_s13, [#allocation4], %s3437_s25, %s3437_s25, %s3438_s26  }
0x1812   :  { %3431 = dma.done.wait [#allocation4], 256  }
0x1813   :  { %3432 = vsyncadd [#allocation4], 4294967040 }
0x1814   :  { %3433 = dma.done.wait [#allocation15], 32  }
0x1815   :  { %3434 = vsyncadd [#allocation15], 4294967264 }
0x1816   :  { %2566 = vsyncpa [#allocation3], 1 }
0x1817   :  { %2567 = vsyncpa [#allocation6], 1 }
0x1818   :  { %2568 = vsyncpa [#allocation9], 1 }
0x1819   :  { %2569 = vsyncpa [#allocation12], 1 }
0x181a   :  { %2570 = vsyncpa [#allocation4], 1 }
0x181b   :  { %2571 = vsyncpa [#allocation15], 1 }

</bundles_post_ra>
